<compile_context>
chip_gen: v6e
topology: v6e:2x2x1
jax: 0.10.0
libtpu: 0.0.40
codegen_flags: <defaults>
</compile_context>

<pallas_src>
import math

import jax
import jax.numpy as jnp
from jax.experimental import pallas as pl
from jax.experimental.pallas import tpu as pltpu

# ----------------------------- configuration -------------------------------
PATCH = 4          # patch_embedding kernel == stride
EMBED_DIM = 32     # conv out channels / layer_norm dim
ENC_DIM = 32       # post_extract_proj output / encoder hidden
NUM_HEADS = 4
FFN_DIM = 64
NUM_LAYERS = 2
LN_EPS = 1e-5
DTYPE = jnp.float32
# NOTE: dims are kept tiny to match the spec; at real BEATs sizes (D=768,
# S~500) the M dimension should be tiled (128-row blocks) and weights cast to
# bf16 (fp8 on v7x, int8 only on v5e/v6e) instead of whole-slab f32 blocks.


# ------------------------- fully fused forward kernel ----------------------
def _fused_forward_kernel(
        patches_ref,                                   # (1, nP, p*p)
        patch_w_ref, patch_b_ref,                      # (p*p, E), (1, E)
        ln_g_ref, ln_b_ref,                            # (1, E), (1, E)
        proj_w_ref, proj_b_ref,                        # (E, D), (1, D)
        ln1_g_ref, ln1_b_ref,                          # (L, 1, D) x2
        wqkv_ref, bqkv_ref,                            # (L, D, 3D), (L, 1, 3D)
        wo_ref, bo_ref,                                # (L, D, D), (L, 1, D)
        ln2_g_ref, ln2_b_ref,                          # (L, 1, D) x2
        w1_ref, b1_ref,                                # (L, D, F), (L, 1, F)
        w2_ref, b2_ref,                                # (L, F, D), (L, 1, D)
        out_ref):                                      # (1, nP, D)
    f32 = jnp.float32

    def ln(x, g, b):
        mu = jnp.mean(x, axis=-1, keepdims=True)
        xc = x - mu
        var = jnp.mean(xc * xc, axis=-1, keepdims=True)
        return xc * jax.lax.rsqrt(var + LN_EPS) * g + b

    def gelu(y):  # exact erf-based GELU, matching torch.nn.GELU default
        return 0.5 * y * (1.0 + jax.lax.erf(y * (1.0 / math.sqrt(2.0))))

    x = patches_ref[0].astype(f32)                     # (nP, p*p)

    # --- stem: patch_embedding (Conv2d k==stride) + layer_norm + proj -------
    h = jnp.dot(x, patch_w_ref[...].astype(f32),
                preferred_element_type=f32) + patch_b_ref[...].astype(f32)
    h = ln(h, ln_g_ref[...].astype(f32), ln_b_ref[...].astype(f32))
    h = jnp.dot(h, proj_w_ref[...].astype(f32),
                preferred_element_type=f32) + proj_b_ref[...].astype(f32)
    # dropout_input: identity at inference time.

    S, D = h.shape
    Dh = D // NUM_HEADS
    scale = Dh ** -0.5
    dn = (((1,), (1,)), ((), ()))   # contract last dims of both operands

    for l in range(NUM_LAYERS):      # static unroll over stacked layer params
        # ---------------- MHSA: LN1 + fused QKV + attn + out-proj + residual
        xn = ln(h, ln1_g_ref[l].astype(f32), ln1_b_ref[l].astype(f32))
        qkv = jnp.dot(xn, wqkv_ref[l].astype(f32),
                      preferred_element_type=f32) + bqkv_ref[l].astype(f32)
        q = qkv[:, 0:D] * scale                        # scale folded into q
        k = qkv[:, D:2 * D]
        v = qkv[:, 2 * D:3 * D]

        head_outs = []
        for hd in range(NUM_HEADS):                    # heads stay packed
            lo, hi = hd * Dh, (hd + 1) * Dh
            s = jax.lax.dot_general(q[:, lo:hi], k[:, lo:hi], dn,
                                    preferred_element_type=f32)   # (S, S)
            m = jnp.max(s, axis=-1, keepdims=True)
            p = jnp.exp(s - m)
            inv = pl.reciprocal(jnp.sum(p, axis=-1, keepdims=True), approx=True)
            p = p * inv
            head_outs.append(jnp.dot(p, v[:, lo:hi],
                                     preferred_element_type=f32))  # (S, Dh)
        attn = jnp.concatenate(head_outs, axis=-1)                 # (S, D)

        h = h + (jnp.dot(attn, wo_ref[l].astype(f32),
                         preferred_element_type=f32) + bo_ref[l].astype(f32))

        # ---------------- FFN: LN2 + GELU MLP + residual --------------------
        xn = ln(h, ln2_g_ref[l].astype(f32), ln2_b_ref[l].astype(f32))
        y = jnp.dot(xn, w1_ref[l].astype(f32),
                    preferred_element_type=f32) + b1_ref[l].astype(f32)
        y = gelu(y)
        h = h + (jnp.dot(y, w2_ref[l].astype(f32),
                         preferred_element_type=f32) + b2_ref[l].astype(f32))

    out_ref[0] = h.astype(out_ref.dtype)


# ------------------------------ model forward ------------------------------
def model_forward(params, x):
    """x: (B, 1, H, W) NCHW, like the PyTorch Conv2d patch_embedding input."""
    B, C, H, W = x.shape
    assert C == 1
    p = PATCH
    nH, nW = H // p, W // p
    nP = nH * nW
    PP = p * p
    D, F, E, L = ENC_DIM, FFN_DIM, EMBED_DIM, NUM_LAYERS

    # patch extraction = Conv2d(k==stride) im2col; pure layout glue in JAX.
    patches = (x.reshape(B, nH, p, nW, p)
                .transpose(0, 1, 3, 2, 4)
                .reshape(B, nP, PP))

    inputs = (
        patches,
        params["patch_w"], params["patch_b"],
        params["ln_g"], params["ln_b"],
        params["proj_w"], params["proj_b"],
        params["ln1_g"], params["ln1_b"],
        params["wqkv"], params["bqkv"],
        params["wo"], params["bo"],
        params["ln2_g"], params["ln2_b"],
        params["w1"], params["b1"],
        params["w2"], params["b2"],
    )

    def full_spec(a):
        nd = a.ndim
        return pl.BlockSpec(a.shape, lambda b, _nd=nd: (0,) * _nd)

    in_specs = ([pl.BlockSpec((1, nP, PP), lambda b: (b, 0, 0))]
                + [full_spec(a) for a in inputs[1:]])
    out_spec = pl.BlockSpec((1, nP, D), lambda b: (b, 0, 0))

    # advisory cost hint so XLA can overlap surrounding ops with the call
    Dh = D // NUM_HEADS
    flops_per_layer = (2 * nP * D * 3 * D               # fused QKV
                       + NUM_HEADS * 4 * nP * nP * Dh   # scores + p@v
                       + 2 * nP * D * D                 # out proj
                       + 4 * nP * D * F)                # FFN1 + FFN2
    flops = B * (2 * nP * PP * E + 2 * nP * E * D + L * flops_per_layer)
    transcendentals = B * L * (NUM_HEADS * nP * nP      # exp
                               + nP * F                 # erf (GELU)
                               + NUM_HEADS * nP         # reciprocal
                               + 2 * nP) + B * nP       # rsqrt (LNs)
    bytes_accessed = (sum(int(a.size) * a.dtype.itemsize for a in inputs)
                      + B * nP * D * jnp.dtype(DTYPE).itemsize)

    return pl.pallas_call(
        _fused_forward_kernel,
        out_shape=jax.ShapeDtypeStruct((B, nP, D), x.dtype),
        grid=(B,),
        in_specs=in_specs,
        out_specs=out_spec,
        compiler_params=pltpu.CompilerParams(
            dimension_semantics=("parallel",)),
        cost_estimate=pl.CostEstimate(
            flops=int(flops),
            transcendentals=int(transcendentals),
            bytes_accessed=int(bytes_accessed)),
    )(*inputs)

    # TODO(synk): BEATs positional conv / relative position bias in the encoder
    # are not reproduced here (the wrapped model is unspecified by ModelWrapper).


# --------------------------- deterministic params --------------------------
def init_params(key):
    keys = iter(jax.random.split(key, 64))
    D, F, E, L, PP = ENC_DIM, FFN_DIM, EMBED_DIM, NUM_LAYERS, PATCH * PATCH

    def w(shape, scale=0.02):
        return scale * jax.random.normal(next(keys), shape, DTYPE)

    params = {
        # Conv2d weight (E, 1, p, p) flattened row-major over (kh, kw) -> (p*p, E)
        "patch_w": w((E, 1, PATCH, PATCH)).reshape(E, PP).T,
        "patch_b": jnp.zeros((1, E), DTYPE),
        "ln_g": jnp.ones((1, E), DTYPE),
        "ln_b": jnp.zeros((1, E), DTYPE),
        "proj_w": w((E, D)),
        "proj_b": jnp.zeros((1, D), DTYPE),
        # stacked per-layer parameters (leading L axis, indexed statically)
        "ln1_g": jnp.ones((L, 1, D), DTYPE),
        "ln1_b": jnp.zeros((L, 1, D), DTYPE),
        "wqkv": w((L, D, 3 * D)),                 # wq | wk | wv fused
        "bqkv": jnp.zeros((L, 1, 3 * D), DTYPE),
        "wo": w((L, D, D)),
        "bo": jnp.zeros((L, 1, D), DTYPE),
        "ln2_g": jnp.ones((L, 1, D), DTYPE),
        "ln2_b": jnp.zeros((L, 1, D), DTYPE),
        "w1": w((L, D, F)),
        "b1": jnp.zeros((L, 1, F), DTYPE),
        "w2": w((L, F, D)),
        "b2": jnp.zeros((L, 1, D), DTYPE),
    }
    return params


# ---------------------------------- main ------------------------------------
if __name__ == "__main__":
    key = jax.random.PRNGKey(0)
    kx, kp = jax.random.split(key)
    x = jax.random.normal(kx, (2, 1, 16, 16), DTYPE)
    params = init_params(kp)

    out = jax.jit(model_forward)(params, x)
    jax.block_until_ready(out)

    assert out.shape == (2, (16 // PATCH) * (16 // PATCH), ENC_DIM)
    assert bool(jnp.all(jnp.isfinite(out)))
    print("KERNEL_OK")
</pallas_src>

<mosaic_0001>
module attributes {stable_mosaic.version = 11 : i64} {
  func.func @_fused_forward_kernel(%arg0: i32, %arg1: memref<1x16x16xf32, #tpu.memory_space<vmem>>, %arg2: memref<16x32xf32, #tpu.memory_space<vmem>>, %arg3: memref<1x32xf32, #tpu.memory_space<vmem>>, %arg4: memref<1x32xf32, #tpu.memory_space<vmem>>, %arg5: memref<1x32xf32, #tpu.memory_space<vmem>>, %arg6: memref<32x32xf32, #tpu.memory_space<vmem>>, %arg7: memref<1x32xf32, #tpu.memory_space<vmem>>, %arg8: memref<2x1x32xf32, #tpu.memory_space<vmem>>, %arg9: memref<2x1x32xf32, #tpu.memory_space<vmem>>, %arg10: memref<2x32x96xf32, #tpu.memory_space<vmem>>, %arg11: memref<2x1x96xf32, #tpu.memory_space<vmem>>, %arg12: memref<2x32x32xf32, #tpu.memory_space<vmem>>, %arg13: memref<2x1x32xf32, #tpu.memory_space<vmem>>, %arg14: memref<2x1x32xf32, #tpu.memory_space<vmem>>, %arg15: memref<2x1x32xf32, #tpu.memory_space<vmem>>, %arg16: memref<2x32x64xf32, #tpu.memory_space<vmem>>, %arg17: memref<2x1x64xf32, #tpu.memory_space<vmem>>, %arg18: memref<2x64x32xf32, #tpu.memory_space<vmem>>, %arg19: memref<2x1x32xf32, #tpu.memory_space<vmem>>, %arg20: memref<1x16x32xf32, #tpu.memory_space<vmem>>) attributes {dimension_semantics = [#tpu.dimension_semantics<parallel>], iteration_bounds = array<i64: 2>, scalar_prefetch = 0 : i64, scratch_operands = 0 : i64, tpu.core_type = #tpu.core_type<tc>, window_params = [{transform_indices = @transform_0, window_bounds = array<i64: 1, 16, 16>}, {pipeline_mode = #tpu.pipeline_mode<synchronous>, transform_indices = @transform_1, window_bounds = array<i64: 16, 32>}, {pipeline_mode = #tpu.pipeline_mode<synchronous>, transform_indices = @transform_2, window_bounds = array<i64: 1, 32>}, {pipeline_mode = #tpu.pipeline_mode<synchronous>, transform_indices = @transform_3, window_bounds = array<i64: 1, 32>}, {pipeline_mode = #tpu.pipeline_mode<synchronous>, transform_indices = @transform_4, window_bounds = array<i64: 1, 32>}, {pipeline_mode = #tpu.pipeline_mode<synchronous>, transform_indices = @transform_5, window_bounds = array<i64: 32, 32>}, {pipeline_mode = #tpu.pipeline_mode<synchronous>, transform_indices = @transform_6, window_bounds = array<i64: 1, 32>}, {pipeline_mode = #tpu.pipeline_mode<synchronous>, transform_indices = @transform_7, window_bounds = array<i64: 2, 1, 32>}, {pipeline_mode = #tpu.pipeline_mode<synchronous>, transform_indices = @transform_8, window_bounds = array<i64: 2, 1, 32>}, {pipeline_mode = #tpu.pipeline_mode<synchronous>, transform_indices = @transform_9, window_bounds = array<i64: 2, 32, 96>}, {pipeline_mode = #tpu.pipeline_mode<synchronous>, transform_indices = @transform_10, window_bounds = array<i64: 2, 1, 96>}, {pipeline_mode = #tpu.pipeline_mode<synchronous>, transform_indices = @transform_11, window_bounds = array<i64: 2, 32, 32>}, {pipeline_mode = #tpu.pipeline_mode<synchronous>, transform_indices = @transform_12, window_bounds = array<i64: 2, 1, 32>}, {pipeline_mode = #tpu.pipeline_mode<synchronous>, transform_indices = @transform_13, window_bounds = array<i64: 2, 1, 32>}, {pipeline_mode = #tpu.pipeline_mode<synchronous>, transform_indices = @transform_14, window_bounds = array<i64: 2, 1, 32>}, {pipeline_mode = #tpu.pipeline_mode<synchronous>, transform_indices = @transform_15, window_bounds = array<i64: 2, 32, 64>}, {pipeline_mode = #tpu.pipeline_mode<synchronous>, transform_indices = @transform_16, window_bounds = array<i64: 2, 1, 64>}, {pipeline_mode = #tpu.pipeline_mode<synchronous>, transform_indices = @transform_17, window_bounds = array<i64: 2, 64, 32>}, {pipeline_mode = #tpu.pipeline_mode<synchronous>, transform_indices = @transform_18, window_bounds = array<i64: 2, 1, 32>}, {transform_indices = @transform_19, window_bounds = array<i64: 1, 16, 32>}]} {
    %c0 = arith.constant 0 : index
    %c0_0 = arith.constant 0 : index
    %c0_1 = arith.constant 0 : index
    %0 = vector.load %arg1[%c0, %c0_0, %c0_1] : memref<1x16x16xf32, #tpu.memory_space<vmem>>, vector<1x16x16xf32>
    %1 = vector.shape_cast %0 : vector<1x16x16xf32> to vector<16x16xf32>
    %c0_2 = arith.constant 0 : index
    %c0_3 = arith.constant 0 : index
    %2 = vector.load %arg2[%c0_2, %c0_3] : memref<16x32xf32, #tpu.memory_space<vmem>>, vector<16x32xf32>
    %cst = arith.constant dense<0.000000e+00> : vector<16x32xf32>
    %3 = tpu.matmul %1, %2, %cst {dimension_numbers = #tpu.dot_dimension_numbers<[1], [0], [0], [1], [0, 0, 1, 1], [], []>} : vector<16x16xf32>, vector<16x32xf32>, vector<16x32xf32> -> vector<16x32xf32>
    %c0_4 = arith.constant 0 : index
    %c0_5 = arith.constant 0 : index
    %4 = vector.load %arg3[%c0_4, %c0_5] : memref<1x32xf32, #tpu.memory_space<vmem>>, vector<1x32xf32>
    %5 = vector.broadcast %4 : vector<1x32xf32> to vector<16x32xf32>
    %6 = arith.addf %3, %5 : vector<16x32xf32>
    %c0_6 = arith.constant 0 : index
    %c0_7 = arith.constant 0 : index
    %7 = vector.load %arg4[%c0_6, %c0_7] : memref<1x32xf32, #tpu.memory_space<vmem>>, vector<1x32xf32>
    %c0_8 = arith.constant 0 : index
    %c0_9 = arith.constant 0 : index
    %8 = vector.load %arg5[%c0_8, %c0_9] : memref<1x32xf32, #tpu.memory_space<vmem>>, vector<1x32xf32>
    %cst_10 = arith.constant dense<0.000000e+00> : vector<16xf32>
    %9 = vector.multi_reduction <add>, %6, %cst_10 [1] : vector<16x32xf32> to vector<16xf32>
    %10 = vector.shape_cast %9 : vector<16xf32> to vector<16x1xf32>
    %cst_11 = arith.constant 3.200000e+01 : f32
    %11 = vector.broadcast %cst_11 : f32 to vector<16x1xf32>
    %12 = arith.divf %10, %11 : vector<16x1xf32>
    %13 = vector.broadcast %12 : vector<16x1xf32> to vector<16x32xf32>
    %14 = arith.subf %6, %13 : vector<16x32xf32>
    %15 = arith.mulf %14, %14 : vector<16x32xf32>
    %cst_12 = arith.constant dense<0.000000e+00> : vector<16xf32>
    %16 = vector.multi_reduction <add>, %15, %cst_12 [1] : vector<16x32xf32> to vector<16xf32>
    %17 = vector.shape_cast %16 : vector<16xf32> to vector<16x1xf32>
    %cst_13 = arith.constant 3.200000e+01 : f32
    %18 = vector.broadcast %cst_13 : f32 to vector<16x1xf32>
    %19 = arith.divf %17, %18 : vector<16x1xf32>
    %cst_14 = arith.constant 9.99999974E-6 : f32
    %20 = vector.broadcast %cst_14 : f32 to vector<16x1xf32>
    %21 = arith.addf %19, %20 : vector<16x1xf32>
    %22 = math.rsqrt %21 : vector<16x1xf32>
    %23 = vector.broadcast %22 : vector<16x1xf32> to vector<16x32xf32>
    %24 = arith.mulf %14, %23 : vector<16x32xf32>
    %25 = vector.broadcast %7 : vector<1x32xf32> to vector<16x32xf32>
    %26 = arith.mulf %24, %25 : vector<16x32xf32>
    %27 = vector.broadcast %8 : vector<1x32xf32> to vector<16x32xf32>
    %28 = arith.addf %26, %27 : vector<16x32xf32>
    %c0_15 = arith.constant 0 : index
    %c0_16 = arith.constant 0 : index
    %29 = vector.load %arg6[%c0_15, %c0_16] : memref<32x32xf32, #tpu.memory_space<vmem>>, vector<32x32xf32>
    %cst_17 = arith.constant dense<0.000000e+00> : vector<16x32xf32>
    %30 = tpu.matmul %28, %29, %cst_17 {dimension_numbers = #tpu.dot_dimension_numbers<[1], [0], [0], [1], [0, 0, 1, 1], [], []>} : vector<16x32xf32>, vector<32x32xf32>, vector<16x32xf32> -> vector<16x32xf32>
    %c0_18 = arith.constant 0 : index
    %c0_19 = arith.constant 0 : index
    %31 = vector.load %arg7[%c0_18, %c0_19] : memref<1x32xf32, #tpu.memory_space<vmem>>, vector<1x32xf32>
    %32 = vector.broadcast %31 : vector<1x32xf32> to vector<16x32xf32>
    %33 = arith.addf %30, %32 : vector<16x32xf32>
    %c0_20 = arith.constant 0 : index
    %c0_21 = arith.constant 0 : index
    %c0_22 = arith.constant 0 : index
    %34 = vector.load %arg8[%c0_20, %c0_21, %c0_22] : memref<2x1x32xf32, #tpu.memory_space<vmem>>, vector<1x1x32xf32>
    %35 = vector.shape_cast %34 : vector<1x1x32xf32> to vector<1x32xf32>
    %c0_23 = arith.constant 0 : index
    %c0_24 = arith.constant 0 : index
    %c0_25 = arith.constant 0 : index
    %36 = vector.load %arg9[%c0_23, %c0_24, %c0_25] : memref<2x1x32xf32, #tpu.memory_space<vmem>>, vector<1x1x32xf32>
    %37 = vector.shape_cast %36 : vector<1x1x32xf32> to vector<1x32xf32>
    %cst_26 = arith.constant dense<0.000000e+00> : vector<16xf32>
    %38 = vector.multi_reduction <add>, %33, %cst_26 [1] : vector<16x32xf32> to vector<16xf32>
    %39 = vector.shape_cast %38 : vector<16xf32> to vector<16x1xf32>
    %cst_27 = arith.constant 3.200000e+01 : f32
    %40 = vector.broadcast %cst_27 : f32 to vector<16x1xf32>
    %41 = arith.divf %39, %40 : vector<16x1xf32>
    %42 = vector.broadcast %41 : vector<16x1xf32> to vector<16x32xf32>
    %43 = arith.subf %33, %42 : vector<16x32xf32>
    %44 = arith.mulf %43, %43 : vector<16x32xf32>
    %cst_28 = arith.constant dense<0.000000e+00> : vector<16xf32>
    %45 = vector.multi_reduction <add>, %44, %cst_28 [1] : vector<16x32xf32> to vector<16xf32>
    %46 = vector.shape_cast %45 : vector<16xf32> to vector<16x1xf32>
    %cst_29 = arith.constant 3.200000e+01 : f32
    %47 = vector.broadcast %cst_29 : f32 to vector<16x1xf32>
    %48 = arith.divf %46, %47 : vector<16x1xf32>
    %cst_30 = arith.constant 9.99999974E-6 : f32
    %49 = vector.broadcast %cst_30 : f32 to vector<16x1xf32>
    %50 = arith.addf %48, %49 : vector<16x1xf32>
    %51 = math.rsqrt %50 : vector<16x1xf32>
    %52 = vector.broadcast %51 : vector<16x1xf32> to vector<16x32xf32>
    %53 = arith.mulf %43, %52 : vector<16x32xf32>
    %54 = vector.broadcast %35 : vector<1x32xf32> to vector<16x32xf32>
    %55 = arith.mulf %53, %54 : vector<16x32xf32>
    %56 = vector.broadcast %37 : vector<1x32xf32> to vector<16x32xf32>
    %57 = arith.addf %55, %56 : vector<16x32xf32>
    %c0_31 = arith.constant 0 : index
    %c0_32 = arith.constant 0 : index
    %c0_33 = arith.constant 0 : index
    %58 = vector.load %arg10[%c0_31, %c0_32, %c0_33] : memref<2x32x96xf32, #tpu.memory_space<vmem>>, vector<1x32x96xf32>
    %59 = vector.shape_cast %58 : vector<1x32x96xf32> to vector<32x96xf32>
    %cst_34 = arith.constant dense<0.000000e+00> : vector<16x96xf32>
    %60 = tpu.matmul %57, %59, %cst_34 {dimension_numbers = #tpu.dot_dimension_numbers<[1], [0], [0], [1], [0, 0, 1, 1], [], []>} : vector<16x32xf32>, vector<32x96xf32>, vector<16x96xf32> -> vector<16x96xf32>
    %c0_35 = arith.constant 0 : index
    %c0_36 = arith.constant 0 : index
    %c0_37 = arith.constant 0 : index
    %61 = vector.load %arg11[%c0_35, %c0_36, %c0_37] : memref<2x1x96xf32, #tpu.memory_space<vmem>>, vector<1x1x96xf32>
    %62 = vector.shape_cast %61 : vector<1x1x96xf32> to vector<1x96xf32>
    %63 = vector.broadcast %62 : vector<1x96xf32> to vector<16x96xf32>
    %64 = arith.addf %60, %63 : vector<16x96xf32>
    %65 = vector.extract_strided_slice %64 {offsets = [0, 0], sizes = [16, 32], strides = [1, 1]} : vector<16x96xf32> to vector<16x32xf32>
    %cst_38 = arith.constant 0.353553385 : f32
    %66 = vector.broadcast %cst_38 : f32 to vector<16x32xf32>
    %67 = arith.mulf %65, %66 : vector<16x32xf32>
    %68 = vector.extract_strided_slice %64 {offsets = [0, 32], sizes = [16, 32], strides = [1, 1]} : vector<16x96xf32> to vector<16x32xf32>
    %69 = vector.extract_strided_slice %64 {offsets = [0, 64], sizes = [16, 32], strides = [1, 1]} : vector<16x96xf32> to vector<16x32xf32>
    %70 = vector.extract_strided_slice %67 {offsets = [0, 0], sizes = [16, 8], strides = [1, 1]} : vector<16x32xf32> to vector<16x8xf32>
    %71 = vector.extract_strided_slice %68 {offsets = [0, 0], sizes = [16, 8], strides = [1, 1]} : vector<16x32xf32> to vector<16x8xf32>
    %cst_39 = arith.constant dense<0.000000e+00> : vector<16x16xf32>
    %72 = tpu.matmul %70, %71, %cst_39 {dimension_numbers = #tpu.dot_dimension_numbers<[1], [1], [0], [0], [0, 0, 1, 0], [], []>} : vector<16x8xf32>, vector<16x8xf32>, vector<16x16xf32> -> vector<16x16xf32>
    %cst_40 = arith.constant dense<0xFF800000> : vector<16xf32>
    %73 = vector.multi_reduction <maximumf>, %72, %cst_40 [1] : vector<16x16xf32> to vector<16xf32>
    %74 = vector.shape_cast %73 : vector<16xf32> to vector<16x1xf32>
    %75 = vector.broadcast %74 : vector<16x1xf32> to vector<16x16xf32>
    %76 = arith.subf %72, %75 : vector<16x16xf32>
    %77 = math.exp %76 : vector<16x16xf32>
    %cst_41 = arith.constant dense<0.000000e+00> : vector<16xf32>
    %78 = vector.multi_reduction <add>, %77, %cst_41 [1] : vector<16x16xf32> to vector<16xf32>
    %79 = vector.shape_cast %78 : vector<16xf32> to vector<16x1xf32>
    %80 = tpu.reciprocal %79 {approx = true} : vector<16x1xf32> -> vector<16x1xf32>
    %81 = vector.broadcast %80 : vector<16x1xf32> to vector<16x16xf32>
    %82 = arith.mulf %77, %81 : vector<16x16xf32>
    %83 = vector.extract_strided_slice %69 {offsets = [0, 0], sizes = [16, 8], strides = [1, 1]} : vector<16x32xf32> to vector<16x8xf32>
    %cst_42 = arith.constant dense<0.000000e+00> : vector<16x8xf32>
    %84 = tpu.matmul %82, %83, %cst_42 {dimension_numbers = #tpu.dot_dimension_numbers<[1], [0], [0], [1], [0, 0, 1, 1], [], []>} : vector<16x16xf32>, vector<16x8xf32>, vector<16x8xf32> -> vector<16x8xf32>
    %85 = vector.extract_strided_slice %67 {offsets = [0, 8], sizes = [16, 8], strides = [1, 1]} : vector<16x32xf32> to vector<16x8xf32>
    %86 = vector.extract_strided_slice %68 {offsets = [0, 8], sizes = [16, 8], strides = [1, 1]} : vector<16x32xf32> to vector<16x8xf32>
    %cst_43 = arith.constant dense<0.000000e+00> : vector<16x16xf32>
    %87 = tpu.matmul %85, %86, %cst_43 {dimension_numbers = #tpu.dot_dimension_numbers<[1], [1], [0], [0], [0, 0, 1, 0], [], []>} : vector<16x8xf32>, vector<16x8xf32>, vector<16x16xf32> -> vector<16x16xf32>
    %cst_44 = arith.constant dense<0xFF800000> : vector<16xf32>
    %88 = vector.multi_reduction <maximumf>, %87, %cst_44 [1] : vector<16x16xf32> to vector<16xf32>
    %89 = vector.shape_cast %88 : vector<16xf32> to vector<16x1xf32>
    %90 = vector.broadcast %89 : vector<16x1xf32> to vector<16x16xf32>
    %91 = arith.subf %87, %90 : vector<16x16xf32>
    %92 = math.exp %91 : vector<16x16xf32>
    %cst_45 = arith.constant dense<0.000000e+00> : vector<16xf32>
    %93 = vector.multi_reduction <add>, %92, %cst_45 [1] : vector<16x16xf32> to vector<16xf32>
    %94 = vector.shape_cast %93 : vector<16xf32> to vector<16x1xf32>
    %95 = tpu.reciprocal %94 {approx = true} : vector<16x1xf32> -> vector<16x1xf32>
    %96 = vector.broadcast %95 : vector<16x1xf32> to vector<16x16xf32>
    %97 = arith.mulf %92, %96 : vector<16x16xf32>
    %98 = vector.extract_strided_slice %69 {offsets = [0, 8], sizes = [16, 8], strides = [1, 1]} : vector<16x32xf32> to vector<16x8xf32>
    %cst_46 = arith.constant dense<0.000000e+00> : vector<16x8xf32>
    %99 = tpu.matmul %97, %98, %cst_46 {dimension_numbers = #tpu.dot_dimension_numbers<[1], [0], [0], [1], [0, 0, 1, 1], [], []>} : vector<16x16xf32>, vector<16x8xf32>, vector<16x8xf32> -> vector<16x8xf32>
    %100 = vector.extract_strided_slice %67 {offsets = [0, 16], sizes = [16, 8], strides = [1, 1]} : vector<16x32xf32> to vector<16x8xf32>
    %101 = vector.extract_strided_slice %68 {offsets = [0, 16], sizes = [16, 8], strides = [1, 1]} : vector<16x32xf32> to vector<16x8xf32>
    %cst_47 = arith.constant dense<0.000000e+00> : vector<16x16xf32>
    %102 = tpu.matmul %100, %101, %cst_47 {dimension_numbers = #tpu.dot_dimension_numbers<[1], [1], [0], [0], [0, 0, 1, 0], [], []>} : vector<16x8xf32>, vector<16x8xf32>, vector<16x16xf32> -> vector<16x16xf32>
    %cst_48 = arith.constant dense<0xFF800000> : vector<16xf32>
    %103 = vector.multi_reduction <maximumf>, %102, %cst_48 [1] : vector<16x16xf32> to vector<16xf32>
    %104 = vector.shape_cast %103 : vector<16xf32> to vector<16x1xf32>
    %105 = vector.broadcast %104 : vector<16x1xf32> to vector<16x16xf32>
    %106 = arith.subf %102, %105 : vector<16x16xf32>
    %107 = math.exp %106 : vector<16x16xf32>
    %cst_49 = arith.constant dense<0.000000e+00> : vector<16xf32>
    %108 = vector.multi_reduction <add>, %107, %cst_49 [1] : vector<16x16xf32> to vector<16xf32>
    %109 = vector.shape_cast %108 : vector<16xf32> to vector<16x1xf32>
    %110 = tpu.reciprocal %109 {approx = true} : vector<16x1xf32> -> vector<16x1xf32>
    %111 = vector.broadcast %110 : vector<16x1xf32> to vector<16x16xf32>
    %112 = arith.mulf %107, %111 : vector<16x16xf32>
    %113 = vector.extract_strided_slice %69 {offsets = [0, 16], sizes = [16, 8], strides = [1, 1]} : vector<16x32xf32> to vector<16x8xf32>
    %cst_50 = arith.constant dense<0.000000e+00> : vector<16x8xf32>
    %114 = tpu.matmul %112, %113, %cst_50 {dimension_numbers = #tpu.dot_dimension_numbers<[1], [0], [0], [1], [0, 0, 1, 1], [], []>} : vector<16x16xf32>, vector<16x8xf32>, vector<16x8xf32> -> vector<16x8xf32>
    %115 = vector.extract_strided_slice %67 {offsets = [0, 24], sizes = [16, 8], strides = [1, 1]} : vector<16x32xf32> to vector<16x8xf32>
    %116 = vector.extract_strided_slice %68 {offsets = [0, 24], sizes = [16, 8], strides = [1, 1]} : vector<16x32xf32> to vector<16x8xf32>
    %cst_51 = arith.constant dense<0.000000e+00> : vector<16x16xf32>
    %117 = tpu.matmul %115, %116, %cst_51 {dimension_numbers = #tpu.dot_dimension_numbers<[1], [1], [0], [0], [0, 0, 1, 0], [], []>} : vector<16x8xf32>, vector<16x8xf32>, vector<16x16xf32> -> vector<16x16xf32>
    %cst_52 = arith.constant dense<0xFF800000> : vector<16xf32>
    %118 = vector.multi_reduction <maximumf>, %117, %cst_52 [1] : vector<16x16xf32> to vector<16xf32>
    %119 = vector.shape_cast %118 : vector<16xf32> to vector<16x1xf32>
    %120 = vector.broadcast %119 : vector<16x1xf32> to vector<16x16xf32>
    %121 = arith.subf %117, %120 : vector<16x16xf32>
    %122 = math.exp %121 : vector<16x16xf32>
    %cst_53 = arith.constant dense<0.000000e+00> : vector<16xf32>
    %123 = vector.multi_reduction <add>, %122, %cst_53 [1] : vector<16x16xf32> to vector<16xf32>
    %124 = vector.shape_cast %123 : vector<16xf32> to vector<16x1xf32>
    %125 = tpu.reciprocal %124 {approx = true} : vector<16x1xf32> -> vector<16x1xf32>
    %126 = vector.broadcast %125 : vector<16x1xf32> to vector<16x16xf32>
    %127 = arith.mulf %122, %126 : vector<16x16xf32>
    %128 = vector.extract_strided_slice %69 {offsets = [0, 24], sizes = [16, 8], strides = [1, 1]} : vector<16x32xf32> to vector<16x8xf32>
    %cst_54 = arith.constant dense<0.000000e+00> : vector<16x8xf32>
    %129 = tpu.matmul %127, %128, %cst_54 {dimension_numbers = #tpu.dot_dimension_numbers<[1], [0], [0], [1], [0, 0, 1, 1], [], []>} : vector<16x16xf32>, vector<16x8xf32>, vector<16x8xf32> -> vector<16x8xf32>
    %130 = tpu.concatenate %84, %99, %114, %129 in 1 : vector<16x8xf32>, vector<16x8xf32>, vector<16x8xf32>, vector<16x8xf32> -> vector<16x32xf32>
    %c0_55 = arith.constant 0 : index
    %c0_56 = arith.constant 0 : index
    %c0_57 = arith.constant 0 : index
    %131 = vector.load %arg12[%c0_55, %c0_56, %c0_57] : memref<2x32x32xf32, #tpu.memory_space<vmem>>, vector<1x32x32xf32>
    %132 = vector.shape_cast %131 : vector<1x32x32xf32> to vector<32x32xf32>
    %cst_58 = arith.constant dense<0.000000e+00> : vector<16x32xf32>
    %133 = tpu.matmul %130, %132, %cst_58 {dimension_numbers = #tpu.dot_dimension_numbers<[1], [0], [0], [1], [0, 0, 1, 1], [], []>} : vector<16x32xf32>, vector<32x32xf32>, vector<16x32xf32> -> vector<16x32xf32>
    %c0_59 = arith.constant 0 : index
    %c0_60 = arith.constant 0 : index
    %c0_61 = arith.constant 0 : index
    %134 = vector.load %arg13[%c0_59, %c0_60, %c0_61] : memref<2x1x32xf32, #tpu.memory_space<vmem>>, vector<1x1x32xf32>
    %135 = vector.shape_cast %134 : vector<1x1x32xf32> to vector<1x32xf32>
    %136 = vector.broadcast %135 : vector<1x32xf32> to vector<16x32xf32>
    %137 = arith.addf %133, %136 : vector<16x32xf32>
    %138 = arith.addf %33, %137 : vector<16x32xf32>
    %c0_62 = arith.constant 0 : index
    %c0_63 = arith.constant 0 : index
    %c0_64 = arith.constant 0 : index
    %139 = vector.load %arg14[%c0_62, %c0_63, %c0_64] : memref<2x1x32xf32, #tpu.memory_space<vmem>>, vector<1x1x32xf32>
    %140 = vector.shape_cast %139 : vector<1x1x32xf32> to vector<1x32xf32>
    %c0_65 = arith.constant 0 : index
    %c0_66 = arith.constant 0 : index
    %c0_67 = arith.constant 0 : index
    %141 = vector.load %arg15[%c0_65, %c0_66, %c0_67] : memref<2x1x32xf32, #tpu.memory_space<vmem>>, vector<1x1x32xf32>
    %142 = vector.shape_cast %141 : vector<1x1x32xf32> to vector<1x32xf32>
    %cst_68 = arith.constant dense<0.000000e+00> : vector<16xf32>
    %143 = vector.multi_reduction <add>, %138, %cst_68 [1] : vector<16x32xf32> to vector<16xf32>
    %144 = vector.shape_cast %143 : vector<16xf32> to vector<16x1xf32>
    %cst_69 = arith.constant 3.200000e+01 : f32
    %145 = vector.broadcast %cst_69 : f32 to vector<16x1xf32>
    %146 = arith.divf %144, %145 : vector<16x1xf32>
    %147 = vector.broadcast %146 : vector<16x1xf32> to vector<16x32xf32>
    %148 = arith.subf %138, %147 : vector<16x32xf32>
    %149 = arith.mulf %148, %148 : vector<16x32xf32>
    %cst_70 = arith.constant dense<0.000000e+00> : vector<16xf32>
    %150 = vector.multi_reduction <add>, %149, %cst_70 [1] : vector<16x32xf32> to vector<16xf32>
    %151 = vector.shape_cast %150 : vector<16xf32> to vector<16x1xf32>
    %cst_71 = arith.constant 3.200000e+01 : f32
    %152 = vector.broadcast %cst_71 : f32 to vector<16x1xf32>
    %153 = arith.divf %151, %152 : vector<16x1xf32>
    %cst_72 = arith.constant 9.99999974E-6 : f32
    %154 = vector.broadcast %cst_72 : f32 to vector<16x1xf32>
    %155 = arith.addf %153, %154 : vector<16x1xf32>
    %156 = math.rsqrt %155 : vector<16x1xf32>
    %157 = vector.broadcast %156 : vector<16x1xf32> to vector<16x32xf32>
    %158 = arith.mulf %148, %157 : vector<16x32xf32>
    %159 = vector.broadcast %140 : vector<1x32xf32> to vector<16x32xf32>
    %160 = arith.mulf %158, %159 : vector<16x32xf32>
    %161 = vector.broadcast %142 : vector<1x32xf32> to vector<16x32xf32>
    %162 = arith.addf %160, %161 : vector<16x32xf32>
    %c0_73 = arith.constant 0 : index
    %c0_74 = arith.constant 0 : index
    %c0_75 = arith.constant 0 : index
    %163 = vector.load %arg16[%c0_73, %c0_74, %c0_75] : memref<2x32x64xf32, #tpu.memory_space<vmem>>, vector<1x32x64xf32>
    %164 = vector.shape_cast %163 : vector<1x32x64xf32> to vector<32x64xf32>
    %cst_76 = arith.constant dense<0.000000e+00> : vector<16x64xf32>
    %165 = tpu.matmul %162, %164, %cst_76 {dimension_numbers = #tpu.dot_dimension_numbers<[1], [0], [0], [1], [0, 0, 1, 1], [], []>} : vector<16x32xf32>, vector<32x64xf32>, vector<16x64xf32> -> vector<16x64xf32>
    %c0_77 = arith.constant 0 : index
    %c0_78 = arith.constant 0 : index
    %c0_79 = arith.constant 0 : index
    %166 = vector.load %arg17[%c0_77, %c0_78, %c0_79] : memref<2x1x64xf32, #tpu.memory_space<vmem>>, vector<1x1x64xf32>
    %167 = vector.shape_cast %166 : vector<1x1x64xf32> to vector<1x64xf32>
    %168 = vector.broadcast %167 : vector<1x64xf32> to vector<16x64xf32>
    %169 = arith.addf %165, %168 : vector<16x64xf32>
    %cst_80 = arith.constant 5.000000e-01 : f32
    %170 = vector.broadcast %cst_80 : f32 to vector<16x64xf32>
    %171 = arith.mulf %170, %169 : vector<16x64xf32>
    %cst_81 = arith.constant 0.707106769 : f32
    %172 = vector.broadcast %cst_81 : f32 to vector<16x64xf32>
    %173 = arith.mulf %169, %172 : vector<16x64xf32>
    %174 = math.erf %173 : vector<16x64xf32>
    %cst_82 = arith.constant 1.000000e+00 : f32
    %175 = vector.broadcast %cst_82 : f32 to vector<16x64xf32>
    %176 = arith.addf %175, %174 : vector<16x64xf32>
    %177 = arith.mulf %171, %176 : vector<16x64xf32>
    %c0_83 = arith.constant 0 : index
    %c0_84 = arith.constant 0 : index
    %c0_85 = arith.constant 0 : index
    %178 = vector.load %arg18[%c0_83, %c0_84, %c0_85] : memref<2x64x32xf32, #tpu.memory_space<vmem>>, vector<1x64x32xf32>
    %179 = vector.shape_cast %178 : vector<1x64x32xf32> to vector<64x32xf32>
    %cst_86 = arith.constant dense<0.000000e+00> : vector<16x32xf32>
    %180 = tpu.matmul %177, %179, %cst_86 {dimension_numbers = #tpu.dot_dimension_numbers<[1], [0], [0], [1], [0, 0, 1, 1], [], []>} : vector<16x64xf32>, vector<64x32xf32>, vector<16x32xf32> -> vector<16x32xf32>
    %c0_87 = arith.constant 0 : index
    %c0_88 = arith.constant 0 : index
    %c0_89 = arith.constant 0 : index
    %181 = vector.load %arg19[%c0_87, %c0_88, %c0_89] : memref<2x1x32xf32, #tpu.memory_space<vmem>>, vector<1x1x32xf32>
    %182 = vector.shape_cast %181 : vector<1x1x32xf32> to vector<1x32xf32>
    %183 = vector.broadcast %182 : vector<1x32xf32> to vector<16x32xf32>
    %184 = arith.addf %180, %183 : vector<16x32xf32>
    %185 = arith.addf %138, %184 : vector<16x32xf32>
    %c1 = arith.constant 1 : index
    %c0_90 = arith.constant 0 : index
    %c0_91 = arith.constant 0 : index
    %186 = vector.load %arg8[%c1, %c0_90, %c0_91] : memref<2x1x32xf32, #tpu.memory_space<vmem>>, vector<1x1x32xf32>
    %187 = vector.shape_cast %186 : vector<1x1x32xf32> to vector<1x32xf32>
    %c1_92 = arith.constant 1 : index
    %c0_93 = arith.constant 0 : index
    %c0_94 = arith.constant 0 : index
    %188 = vector.load %arg9[%c1_92, %c0_93, %c0_94] : memref<2x1x32xf32, #tpu.memory_space<vmem>>, vector<1x1x32xf32>
    %189 = vector.shape_cast %188 : vector<1x1x32xf32> to vector<1x32xf32>
    %cst_95 = arith.constant dense<0.000000e+00> : vector<16xf32>
    %190 = vector.multi_reduction <add>, %185, %cst_95 [1] : vector<16x32xf32> to vector<16xf32>
    %191 = vector.shape_cast %190 : vector<16xf32> to vector<16x1xf32>
    %cst_96 = arith.constant 3.200000e+01 : f32
    %192 = vector.broadcast %cst_96 : f32 to vector<16x1xf32>
    %193 = arith.divf %191, %192 : vector<16x1xf32>
    %194 = vector.broadcast %193 : vector<16x1xf32> to vector<16x32xf32>
    %195 = arith.subf %185, %194 : vector<16x32xf32>
    %196 = arith.mulf %195, %195 : vector<16x32xf32>
    %cst_97 = arith.constant dense<0.000000e+00> : vector<16xf32>
    %197 = vector.multi_reduction <add>, %196, %cst_97 [1] : vector<16x32xf32> to vector<16xf32>
    %198 = vector.shape_cast %197 : vector<16xf32> to vector<16x1xf32>
    %cst_98 = arith.constant 3.200000e+01 : f32
    %199 = vector.broadcast %cst_98 : f32 to vector<16x1xf32>
    %200 = arith.divf %198, %199 : vector<16x1xf32>
    %cst_99 = arith.constant 9.99999974E-6 : f32
    %201 = vector.broadcast %cst_99 : f32 to vector<16x1xf32>
    %202 = arith.addf %200, %201 : vector<16x1xf32>
    %203 = math.rsqrt %202 : vector<16x1xf32>
    %204 = vector.broadcast %203 : vector<16x1xf32> to vector<16x32xf32>
    %205 = arith.mulf %195, %204 : vector<16x32xf32>
    %206 = vector.broadcast %187 : vector<1x32xf32> to vector<16x32xf32>
    %207 = arith.mulf %205, %206 : vector<16x32xf32>
    %208 = vector.broadcast %189 : vector<1x32xf32> to vector<16x32xf32>
    %209 = arith.addf %207, %208 : vector<16x32xf32>
    %c1_100 = arith.constant 1 : index
    %c0_101 = arith.constant 0 : index
    %c0_102 = arith.constant 0 : index
    %210 = vector.load %arg10[%c1_100, %c0_101, %c0_102] : memref<2x32x96xf32, #tpu.memory_space<vmem>>, vector<1x32x96xf32>
    %211 = vector.shape_cast %210 : vector<1x32x96xf32> to vector<32x96xf32>
    %cst_103 = arith.constant dense<0.000000e+00> : vector<16x96xf32>
    %212 = tpu.matmul %209, %211, %cst_103 {dimension_numbers = #tpu.dot_dimension_numbers<[1], [0], [0], [1], [0, 0, 1, 1], [], []>} : vector<16x32xf32>, vector<32x96xf32>, vector<16x96xf32> -> vector<16x96xf32>
    %c1_104 = arith.constant 1 : index
    %c0_105 = arith.constant 0 : index
    %c0_106 = arith.constant 0 : index
    %213 = vector.load %arg11[%c1_104, %c0_105, %c0_106] : memref<2x1x96xf32, #tpu.memory_space<vmem>>, vector<1x1x96xf32>
    %214 = vector.shape_cast %213 : vector<1x1x96xf32> to vector<1x96xf32>
    %215 = vector.broadcast %214 : vector<1x96xf32> to vector<16x96xf32>
    %216 = arith.addf %212, %215 : vector<16x96xf32>
    %217 = vector.extract_strided_slice %216 {offsets = [0, 0], sizes = [16, 32], strides = [1, 1]} : vector<16x96xf32> to vector<16x32xf32>
    %cst_107 = arith.constant 0.353553385 : f32
    %218 = vector.broadcast %cst_107 : f32 to vector<16x32xf32>
    %219 = arith.mulf %217, %218 : vector<16x32xf32>
    %220 = vector.extract_strided_slice %216 {offsets = [0, 32], sizes = [16, 32], strides = [1, 1]} : vector<16x96xf32> to vector<16x32xf32>
    %221 = vector.extract_strided_slice %216 {offsets = [0, 64], sizes = [16, 32], strides = [1, 1]} : vector<16x96xf32> to vector<16x32xf32>
    %222 = vector.extract_strided_slice %219 {offsets = [0, 0], sizes = [16, 8], strides = [1, 1]} : vector<16x32xf32> to vector<16x8xf32>
    %223 = vector.extract_strided_slice %220 {offsets = [0, 0], sizes = [16, 8], strides = [1, 1]} : vector<16x32xf32> to vector<16x8xf32>
    %cst_108 = arith.constant dense<0.000000e+00> : vector<16x16xf32>
    %224 = tpu.matmul %222, %223, %cst_108 {dimension_numbers = #tpu.dot_dimension_numbers<[1], [1], [0], [0], [0, 0, 1, 0], [], []>} : vector<16x8xf32>, vector<16x8xf32>, vector<16x16xf32> -> vector<16x16xf32>
    %cst_109 = arith.constant dense<0xFF800000> : vector<16xf32>
    %225 = vector.multi_reduction <maximumf>, %224, %cst_109 [1] : vector<16x16xf32> to vector<16xf32>
    %226 = vector.shape_cast %225 : vector<16xf32> to vector<16x1xf32>
    %227 = vector.broadcast %226 : vector<16x1xf32> to vector<16x16xf32>
    %228 = arith.subf %224, %227 : vector<16x16xf32>
    %229 = math.exp %228 : vector<16x16xf32>
    %cst_110 = arith.constant dense<0.000000e+00> : vector<16xf32>
    %230 = vector.multi_reduction <add>, %229, %cst_110 [1] : vector<16x16xf32> to vector<16xf32>
    %231 = vector.shape_cast %230 : vector<16xf32> to vector<16x1xf32>
    %232 = tpu.reciprocal %231 {approx = true} : vector<16x1xf32> -> vector<16x1xf32>
    %233 = vector.broadcast %232 : vector<16x1xf32> to vector<16x16xf32>
    %234 = arith.mulf %229, %233 : vector<16x16xf32>
    %235 = vector.extract_strided_slice %221 {offsets = [0, 0], sizes = [16, 8], strides = [1, 1]} : vector<16x32xf32> to vector<16x8xf32>
    %cst_111 = arith.constant dense<0.000000e+00> : vector<16x8xf32>
    %236 = tpu.matmul %234, %235, %cst_111 {dimension_numbers = #tpu.dot_dimension_numbers<[1], [0], [0], [1], [0, 0, 1, 1], [], []>} : vector<16x16xf32>, vector<16x8xf32>, vector<16x8xf32> -> vector<16x8xf32>
    %237 = vector.extract_strided_slice %219 {offsets = [0, 8], sizes = [16, 8], strides = [1, 1]} : vector<16x32xf32> to vector<16x8xf32>
    %238 = vector.extract_strided_slice %220 {offsets = [0, 8], sizes = [16, 8], strides = [1, 1]} : vector<16x32xf32> to vector<16x8xf32>
    %cst_112 = arith.constant dense<0.000000e+00> : vector<16x16xf32>
    %239 = tpu.matmul %237, %238, %cst_112 {dimension_numbers = #tpu.dot_dimension_numbers<[1], [1], [0], [0], [0, 0, 1, 0], [], []>} : vector<16x8xf32>, vector<16x8xf32>, vector<16x16xf32> -> vector<16x16xf32>
    %cst_113 = arith.constant dense<0xFF800000> : vector<16xf32>
    %240 = vector.multi_reduction <maximumf>, %239, %cst_113 [1] : vector<16x16xf32> to vector<16xf32>
    %241 = vector.shape_cast %240 : vector<16xf32> to vector<16x1xf32>
    %242 = vector.broadcast %241 : vector<16x1xf32> to vector<16x16xf32>
    %243 = arith.subf %239, %242 : vector<16x16xf32>
    %244 = math.exp %243 : vector<16x16xf32>
    %cst_114 = arith.constant dense<0.000000e+00> : vector<16xf32>
    %245 = vector.multi_reduction <add>, %244, %cst_114 [1] : vector<16x16xf32> to vector<16xf32>
    %246 = vector.shape_cast %245 : vector<16xf32> to vector<16x1xf32>
    %247 = tpu.reciprocal %246 {approx = true} : vector<16x1xf32> -> vector<16x1xf32>
    %248 = vector.broadcast %247 : vector<16x1xf32> to vector<16x16xf32>
    %249 = arith.mulf %244, %248 : vector<16x16xf32>
    %250 = vector.extract_strided_slice %221 {offsets = [0, 8], sizes = [16, 8], strides = [1, 1]} : vector<16x32xf32> to vector<16x8xf32>
    %cst_115 = arith.constant dense<0.000000e+00> : vector<16x8xf32>
    %251 = tpu.matmul %249, %250, %cst_115 {dimension_numbers = #tpu.dot_dimension_numbers<[1], [0], [0], [1], [0, 0, 1, 1], [], []>} : vector<16x16xf32>, vector<16x8xf32>, vector<16x8xf32> -> vector<16x8xf32>
    %252 = vector.extract_strided_slice %219 {offsets = [0, 16], sizes = [16, 8], strides = [1, 1]} : vector<16x32xf32> to vector<16x8xf32>
    %253 = vector.extract_strided_slice %220 {offsets = [0, 16], sizes = [16, 8], strides = [1, 1]} : vector<16x32xf32> to vector<16x8xf32>
    %cst_116 = arith.constant dense<0.000000e+00> : vector<16x16xf32>
    %254 = tpu.matmul %252, %253, %cst_116 {dimension_numbers = #tpu.dot_dimension_numbers<[1], [1], [0], [0], [0, 0, 1, 0], [], []>} : vector<16x8xf32>, vector<16x8xf32>, vector<16x16xf32> -> vector<16x16xf32>
    %cst_117 = arith.constant dense<0xFF800000> : vector<16xf32>
    %255 = vector.multi_reduction <maximumf>, %254, %cst_117 [1] : vector<16x16xf32> to vector<16xf32>
    %256 = vector.shape_cast %255 : vector<16xf32> to vector<16x1xf32>
    %257 = vector.broadcast %256 : vector<16x1xf32> to vector<16x16xf32>
    %258 = arith.subf %254, %257 : vector<16x16xf32>
    %259 = math.exp %258 : vector<16x16xf32>
    %cst_118 = arith.constant dense<0.000000e+00> : vector<16xf32>
    %260 = vector.multi_reduction <add>, %259, %cst_118 [1] : vector<16x16xf32> to vector<16xf32>
    %261 = vector.shape_cast %260 : vector<16xf32> to vector<16x1xf32>
    %262 = tpu.reciprocal %261 {approx = true} : vector<16x1xf32> -> vector<16x1xf32>
    %263 = vector.broadcast %262 : vector<16x1xf32> to vector<16x16xf32>
    %264 = arith.mulf %259, %263 : vector<16x16xf32>
    %265 = vector.extract_strided_slice %221 {offsets = [0, 16], sizes = [16, 8], strides = [1, 1]} : vector<16x32xf32> to vector<16x8xf32>
    %cst_119 = arith.constant dense<0.000000e+00> : vector<16x8xf32>
    %266 = tpu.matmul %264, %265, %cst_119 {dimension_numbers = #tpu.dot_dimension_numbers<[1], [0], [0], [1], [0, 0, 1, 1], [], []>} : vector<16x16xf32>, vector<16x8xf32>, vector<16x8xf32> -> vector<16x8xf32>
    %267 = vector.extract_strided_slice %219 {offsets = [0, 24], sizes = [16, 8], strides = [1, 1]} : vector<16x32xf32> to vector<16x8xf32>
    %268 = vector.extract_strided_slice %220 {offsets = [0, 24], sizes = [16, 8], strides = [1, 1]} : vector<16x32xf32> to vector<16x8xf32>
    %cst_120 = arith.constant dense<0.000000e+00> : vector<16x16xf32>
    %269 = tpu.matmul %267, %268, %cst_120 {dimension_numbers = #tpu.dot_dimension_numbers<[1], [1], [0], [0], [0, 0, 1, 0], [], []>} : vector<16x8xf32>, vector<16x8xf32>, vector<16x16xf32> -> vector<16x16xf32>
    %cst_121 = arith.constant dense<0xFF800000> : vector<16xf32>
    %270 = vector.multi_reduction <maximumf>, %269, %cst_121 [1] : vector<16x16xf32> to vector<16xf32>
    %271 = vector.shape_cast %270 : vector<16xf32> to vector<16x1xf32>
    %272 = vector.broadcast %271 : vector<16x1xf32> to vector<16x16xf32>
    %273 = arith.subf %269, %272 : vector<16x16xf32>
    %274 = math.exp %273 : vector<16x16xf32>
    %cst_122 = arith.constant dense<0.000000e+00> : vector<16xf32>
    %275 = vector.multi_reduction <add>, %274, %cst_122 [1] : vector<16x16xf32> to vector<16xf32>
    %276 = vector.shape_cast %275 : vector<16xf32> to vector<16x1xf32>
    %277 = tpu.reciprocal %276 {approx = true} : vector<16x1xf32> -> vector<16x1xf32>
    %278 = vector.broadcast %277 : vector<16x1xf32> to vector<16x16xf32>
    %279 = arith.mulf %274, %278 : vector<16x16xf32>
    %280 = vector.extract_strided_slice %221 {offsets = [0, 24], sizes = [16, 8], strides = [1, 1]} : vector<16x32xf32> to vector<16x8xf32>
    %cst_123 = arith.constant dense<0.000000e+00> : vector<16x8xf32>
    %281 = tpu.matmul %279, %280, %cst_123 {dimension_numbers = #tpu.dot_dimension_numbers<[1], [0], [0], [1], [0, 0, 1, 1], [], []>} : vector<16x16xf32>, vector<16x8xf32>, vector<16x8xf32> -> vector<16x8xf32>
    %282 = tpu.concatenate %236, %251, %266, %281 in 1 : vector<16x8xf32>, vector<16x8xf32>, vector<16x8xf32>, vector<16x8xf32> -> vector<16x32xf32>
    %c1_124 = arith.constant 1 : index
    %c0_125 = arith.constant 0 : index
    %c0_126 = arith.constant 0 : index
    %283 = vector.load %arg12[%c1_124, %c0_125, %c0_126] : memref<2x32x32xf32, #tpu.memory_space<vmem>>, vector<1x32x32xf32>
    %284 = vector.shape_cast %283 : vector<1x32x32xf32> to vector<32x32xf32>
    %cst_127 = arith.constant dense<0.000000e+00> : vector<16x32xf32>
    %285 = tpu.matmul %282, %284, %cst_127 {dimension_numbers = #tpu.dot_dimension_numbers<[1], [0], [0], [1], [0, 0, 1, 1], [], []>} : vector<16x32xf32>, vector<32x32xf32>, vector<16x32xf32> -> vector<16x32xf32>
    %c1_128 = arith.constant 1 : index
    %c0_129 = arith.constant 0 : index
    %c0_130 = arith.constant 0 : index
    %286 = vector.load %arg13[%c1_128, %c0_129, %c0_130] : memref<2x1x32xf32, #tpu.memory_space<vmem>>, vector<1x1x32xf32>
    %287 = vector.shape_cast %286 : vector<1x1x32xf32> to vector<1x32xf32>
    %288 = vector.broadcast %287 : vector<1x32xf32> to vector<16x32xf32>
    %289 = arith.addf %285, %288 : vector<16x32xf32>
    %290 = arith.addf %185, %289 : vector<16x32xf32>
    %c1_131 = arith.constant 1 : index
    %c0_132 = arith.constant 0 : index
    %c0_133 = arith.constant 0 : index
    %291 = vector.load %arg14[%c1_131, %c0_132, %c0_133] : memref<2x1x32xf32, #tpu.memory_space<vmem>>, vector<1x1x32xf32>
    %292 = vector.shape_cast %291 : vector<1x1x32xf32> to vector<1x32xf32>
    %c1_134 = arith.constant 1 : index
    %c0_135 = arith.constant 0 : index
    %c0_136 = arith.constant 0 : index
    %293 = vector.load %arg15[%c1_134, %c0_135, %c0_136] : memref<2x1x32xf32, #tpu.memory_space<vmem>>, vector<1x1x32xf32>
    %294 = vector.shape_cast %293 : vector<1x1x32xf32> to vector<1x32xf32>
    %cst_137 = arith.constant dense<0.000000e+00> : vector<16xf32>
    %295 = vector.multi_reduction <add>, %290, %cst_137 [1] : vector<16x32xf32> to vector<16xf32>
    %296 = vector.shape_cast %295 : vector<16xf32> to vector<16x1xf32>
    %cst_138 = arith.constant 3.200000e+01 : f32
    %297 = vector.broadcast %cst_138 : f32 to vector<16x1xf32>
    %298 = arith.divf %296, %297 : vector<16x1xf32>
    %299 = vector.broadcast %298 : vector<16x1xf32> to vector<16x32xf32>
    %300 = arith.subf %290, %299 : vector<16x32xf32>
    %301 = arith.mulf %300, %300 : vector<16x32xf32>
    %cst_139 = arith.constant dense<0.000000e+00> : vector<16xf32>
    %302 = vector.multi_reduction <add>, %301, %cst_139 [1] : vector<16x32xf32> to vector<16xf32>
    %303 = vector.shape_cast %302 : vector<16xf32> to vector<16x1xf32>
    %cst_140 = arith.constant 3.200000e+01 : f32
    %304 = vector.broadcast %cst_140 : f32 to vector<16x1xf32>
    %305 = arith.divf %303, %304 : vector<16x1xf32>
    %cst_141 = arith.constant 9.99999974E-6 : f32
    %306 = vector.broadcast %cst_141 : f32 to vector<16x1xf32>
    %307 = arith.addf %305, %306 : vector<16x1xf32>
    %308 = math.rsqrt %307 : vector<16x1xf32>
    %309 = vector.broadcast %308 : vector<16x1xf32> to vector<16x32xf32>
    %310 = arith.mulf %300, %309 : vector<16x32xf32>
    %311 = vector.broadcast %292 : vector<1x32xf32> to vector<16x32xf32>
    %312 = arith.mulf %310, %311 : vector<16x32xf32>
    %313 = vector.broadcast %294 : vector<1x32xf32> to vector<16x32xf32>
    %314 = arith.addf %312, %313 : vector<16x32xf32>
    %c1_142 = arith.constant 1 : index
    %c0_143 = arith.constant 0 : index
    %c0_144 = arith.constant 0 : index
    %315 = vector.load %arg16[%c1_142, %c0_143, %c0_144] : memref<2x32x64xf32, #tpu.memory_space<vmem>>, vector<1x32x64xf32>
    %316 = vector.shape_cast %315 : vector<1x32x64xf32> to vector<32x64xf32>
    %cst_145 = arith.constant dense<0.000000e+00> : vector<16x64xf32>
    %317 = tpu.matmul %314, %316, %cst_145 {dimension_numbers = #tpu.dot_dimension_numbers<[1], [0], [0], [1], [0, 0, 1, 1], [], []>} : vector<16x32xf32>, vector<32x64xf32>, vector<16x64xf32> -> vector<16x64xf32>
    %c1_146 = arith.constant 1 : index
    %c0_147 = arith.constant 0 : index
    %c0_148 = arith.constant 0 : index
    %318 = vector.load %arg17[%c1_146, %c0_147, %c0_148] : memref<2x1x64xf32, #tpu.memory_space<vmem>>, vector<1x1x64xf32>
    %319 = vector.shape_cast %318 : vector<1x1x64xf32> to vector<1x64xf32>
    %320 = vector.broadcast %319 : vector<1x64xf32> to vector<16x64xf32>
    %321 = arith.addf %317, %320 : vector<16x64xf32>
    %cst_149 = arith.constant 5.000000e-01 : f32
    %322 = vector.broadcast %cst_149 : f32 to vector<16x64xf32>
    %323 = arith.mulf %322, %321 : vector<16x64xf32>
    %cst_150 = arith.constant 0.707106769 : f32
    %324 = vector.broadcast %cst_150 : f32 to vector<16x64xf32>
    %325 = arith.mulf %321, %324 : vector<16x64xf32>
    %326 = math.erf %325 : vector<16x64xf32>
    %cst_151 = arith.constant 1.000000e+00 : f32
    %327 = vector.broadcast %cst_151 : f32 to vector<16x64xf32>
    %328 = arith.addf %327, %326 : vector<16x64xf32>
    %329 = arith.mulf %323, %328 : vector<16x64xf32>
    %c1_152 = arith.constant 1 : index
    %c0_153 = arith.constant 0 : index
    %c0_154 = arith.constant 0 : index
    %330 = vector.load %arg18[%c1_152, %c0_153, %c0_154] : memref<2x64x32xf32, #tpu.memory_space<vmem>>, vector<1x64x32xf32>
    %331 = vector.shape_cast %330 : vector<1x64x32xf32> to vector<64x32xf32>
    %cst_155 = arith.constant dense<0.000000e+00> : vector<16x32xf32>
    %332 = tpu.matmul %329, %331, %cst_155 {dimension_numbers = #tpu.dot_dimension_numbers<[1], [0], [0], [1], [0, 0, 1, 1], [], []>} : vector<16x64xf32>, vector<64x32xf32>, vector<16x32xf32> -> vector<16x32xf32>
    %c1_156 = arith.constant 1 : index
    %c0_157 = arith.constant 0 : index
    %c0_158 = arith.constant 0 : index
    %333 = vector.load %arg19[%c1_156, %c0_157, %c0_158] : memref<2x1x32xf32, #tpu.memory_space<vmem>>, vector<1x1x32xf32>
    %334 = vector.shape_cast %333 : vector<1x1x32xf32> to vector<1x32xf32>
    %335 = vector.broadcast %334 : vector<1x32xf32> to vector<16x32xf32>
    %336 = arith.addf %332, %335 : vector<16x32xf32>
    %337 = arith.addf %290, %336 : vector<16x32xf32>
    %c0_159 = arith.constant 0 : index
    %c0_160 = arith.constant 0 : index
    %c0_161 = arith.constant 0 : index
    %338 = vector.load %arg20[%c0_159, %c0_160, %c0_161] : memref<1x16x32xf32, #tpu.memory_space<vmem>>, vector<1x16x32xf32>
    %339 = vector.shape_cast %338 : vector<1x16x32xf32> to vector<16x32xf32>
    %340 = vector.shape_cast %337 : vector<16x32xf32> to vector<1x16x32xf32>
    tpu.vector_store %arg20[%c0_159, %c0_160, %c0_161], %340 {strides = array<i32>} : memref<1x16x32xf32, #tpu.memory_space<vmem>>, vector<1x16x32xf32>,
    return
  }
  func.func @transform_0(%arg0: i32) -> (i32, i32, i32) {
    %c0_i32 = arith.constant 0 : i32
    %c0_i32_0 = arith.constant 0 : i32
    %c0_i32_1 = arith.constant 0 : i32
    return %arg0, %c0_i32, %c0_i32_0 : i32, i32, i32
  }
  func.func @transform_1(%arg0: i32) -> (i32, i32) {
    %c0_i32 = arith.constant 0 : i32
    %c0_i32_0 = arith.constant 0 : i32
    %c0_i32_1 = arith.constant 0 : i32
    return %c0_i32, %c0_i32_0 : i32, i32
  }
  func.func @transform_2(%arg0: i32) -> (i32, i32) {
    %c0_i32 = arith.constant 0 : i32
    %c0_i32_0 = arith.constant 0 : i32
    %c0_i32_1 = arith.constant 0 : i32
    return %c0_i32, %c0_i32_0 : i32, i32
  }
  func.func @transform_3(%arg0: i32) -> (i32, i32) {
    %c0_i32 = arith.constant 0 : i32
    %c0_i32_0 = arith.constant 0 : i32
    %c0_i32_1 = arith.constant 0 : i32
    return %c0_i32, %c0_i32_0 : i32, i32
  }
  func.func @transform_4(%arg0: i32) -> (i32, i32) {
    %c0_i32 = arith.constant 0 : i32
    %c0_i32_0 = arith.constant 0 : i32
    %c0_i32_1 = arith.constant 0 : i32
    return %c0_i32, %c0_i32_0 : i32, i32
  }
  func.func @transform_5(%arg0: i32) -> (i32, i32) {
    %c0_i32 = arith.constant 0 : i32
    %c0_i32_0 = arith.constant 0 : i32
    %c0_i32_1 = arith.constant 0 : i32
    return %c0_i32, %c0_i32_0 : i32, i32
  }
  func.func @transform_6(%arg0: i32) -> (i32, i32) {
    %c0_i32 = arith.constant 0 : i32
    %c0_i32_0 = arith.constant 0 : i32
    %c0_i32_1 = arith.constant 0 : i32
    return %c0_i32, %c0_i32_0 : i32, i32
  }
  func.func @transform_7(%arg0: i32) -> (i32, i32, i32) {
    %c0_i32 = arith.constant 0 : i32
    %c0_i32_0 = arith.constant 0 : i32
    %c0_i32_1 = arith.constant 0 : i32
    %c0_i32_2 = arith.constant 0 : i32
    return %c0_i32, %c0_i32_0, %c0_i32_1 : i32, i32, i32
  }
  func.func @transform_8(%arg0: i32) -> (i32, i32, i32) {
    %c0_i32 = arith.constant 0 : i32
    %c0_i32_0 = arith.constant 0 : i32
    %c0_i32_1 = arith.constant 0 : i32
    %c0_i32_2 = arith.constant 0 : i32
    return %c0_i32, %c0_i32_0, %c0_i32_1 : i32, i32, i32
  }
  func.func @transform_9(%arg0: i32) -> (i32, i32, i32) {
    %c0_i32 = arith.constant 0 : i32
    %c0_i32_0 = arith.constant 0 : i32
    %c0_i32_1 = arith.constant 0 : i32
    %c0_i32_2 = arith.constant 0 : i32
    return %c0_i32, %c0_i32_0, %c0_i32_1 : i32, i32, i32
  }
  func.func @transform_10(%arg0: i32) -> (i32, i32, i32) {
    %c0_i32 = arith.constant 0 : i32
    %c0_i32_0 = arith.constant 0 : i32
    %c0_i32_1 = arith.constant 0 : i32
    %c0_i32_2 = arith.constant 0 : i32
    return %c0_i32, %c0_i32_0, %c0_i32_1 : i32, i32, i32
  }
  func.func @transform_11(%arg0: i32) -> (i32, i32, i32) {
    %c0_i32 = arith.constant 0 : i32
    %c0_i32_0 = arith.constant 0 : i32
    %c0_i32_1 = arith.constant 0 : i32
    %c0_i32_2 = arith.constant 0 : i32
    return %c0_i32, %c0_i32_0, %c0_i32_1 : i32, i32, i32
  }
  func.func @transform_12(%arg0: i32) -> (i32, i32, i32) {
    %c0_i32 = arith.constant 0 : i32
    %c0_i32_0 = arith.constant 0 : i32
    %c0_i32_1 = arith.constant 0 : i32
    %c0_i32_2 = arith.constant 0 : i32
    return %c0_i32, %c0_i32_0, %c0_i32_1 : i32, i32, i32
  }
  func.func @transform_13(%arg0: i32) -> (i32, i32, i32) {
    %c0_i32 = arith.constant 0 : i32
    %c0_i32_0 = arith.constant 0 : i32
    %c0_i32_1 = arith.constant 0 : i32
    %c0_i32_2 = arith.constant 0 : i32
    return %c0_i32, %c0_i32_0, %c0_i32_1 : i32, i32, i32
  }
  func.func @transform_14(%arg0: i32) -> (i32, i32, i32) {
    %c0_i32 = arith.constant 0 : i32
    %c0_i32_0 = arith.constant 0 : i32
    %c0_i32_1 = arith.constant 0 : i32
    %c0_i32_2 = arith.constant 0 : i32
    return %c0_i32, %c0_i32_0, %c0_i32_1 : i32, i32, i32
  }
  func.func @transform_15(%arg0: i32) -> (i32, i32, i32) {
    %c0_i32 = arith.constant 0 : i32
    %c0_i32_0 = arith.constant 0 : i32
    %c0_i32_1 = arith.constant 0 : i32
    %c0_i32_2 = arith.constant 0 : i32
    return %c0_i32, %c0_i32_0, %c0_i32_1 : i32, i32, i32
  }
  func.func @transform_16(%arg0: i32) -> (i32, i32, i32) {
    %c0_i32 = arith.constant 0 : i32
    %c0_i32_0 = arith.constant 0 : i32
    %c0_i32_1 = arith.constant 0 : i32
    %c0_i32_2 = arith.constant 0 : i32
    return %c0_i32, %c0_i32_0, %c0_i32_1 : i32, i32, i32
  }
  func.func @transform_17(%arg0: i32) -> (i32, i32, i32) {
    %c0_i32 = arith.constant 0 : i32
    %c0_i32_0 = arith.constant 0 : i32
    %c0_i32_1 = arith.constant 0 : i32
    %c0_i32_2 = arith.constant 0 : i32
    return %c0_i32, %c0_i32_0, %c0_i32_1 : i32, i32, i32
  }
  func.func @transform_18(%arg0: i32) -> (i32, i32, i32) {
    %c0_i32 = arith.constant 0 : i32
    %c0_i32_0 = arith.constant 0 : i32
    %c0_i32_1 = arith.constant 0 : i32
    %c0_i32_2 = arith.constant 0 : i32
    return %c0_i32, %c0_i32_0, %c0_i32_1 : i32, i32, i32
  }
  func.func @transform_19(%arg0: i32) -> (i32, i32, i32) {
    %c0_i32 = arith.constant 0 : i32
    %c0_i32_0 = arith.constant 0 : i32
    %c0_i32_1 = arith.constant 0 : i32
    return %arg0, %c0_i32, %c0_i32_0 : i32, i32, i32
  }
}

</mosaic_0001>

<bundles_post_ra>
// kernel: model_forward.1
= control target key start
LH: loop header
LB: loop body
LE: loop exit
PB: predicated region body
PF: predicated region fallthrough
CT: control target
= control target key end

     0   :  { %s4991_s0 = inlined_call_operand.vmem [shape: f32[2,16,16], index: 0, kind: input, shape index: {}]   ;;  %s4992_s1 = inlined_call_operand.vmem [shape: f32[16,32], index: 1, kind: input, shape index: {}]   ;;  %s4993_s2 = inlined_call_operand.vmem [shape: f32[1,32], index: 2, kind: input, shape index: {}]   ;;  %s4994_s3 = inlined_call_operand.vmem [shape: f32[1,32], index: 3, kind: input, shape index: {}]   ;;  %s4995_s4 = inlined_call_operand.vmem [shape: f32[1,32], index: 4, kind: input, shape index: {}]   ;;  %s4996_s5 = inlined_call_operand.vmem [shape: f32[32,32], index: 5, kind: input, shape index: {}]   ;;  %s4997_s6 = inlined_call_operand.vmem [shape: f32[1,32], index: 6, kind: input, shape index: {}]   ;;  %s4998_s7 = inlined_call_operand.vmem [shape: f32[2,1,32], index: 7, kind: input, shape index: {}]   ;;  %s4999_s8 = inlined_call_operand.vmem [shape: f32[2,1,32], index: 8, kind: input, shape index: {}]   ;;  %s5000_s9 = inlined_call_operand.vmem [shape: f32[2,32,96], index: 9, kind: input, shape index: {}]   ;;  %s5001_s10 = inlined_call_operand.vmem [shape: f32[2,1,96], index: 10, kind: input, shape index: {}]   ;;  %s5002_s11 = inlined_call_operand.vmem [shape: f32[2,32,32], index: 11, kind: input, shape index: {}]   ;;  %s5003_s12 = inlined_call_operand.vmem [shape: f32[2,1,32], index: 12, kind: input, shape index: {}]   ;;  %s5004_s13 = inlined_call_operand.vmem [shape: f32[2,1,32], index: 13, kind: input, shape index: {}]   ;;  %s5005_s14 = inlined_call_operand.vmem [shape: f32[2,1,32], index: 14, kind: input, shape index: {}]   ;;  %s5006_s15 = inlined_call_operand.vmem [shape: f32[2,32,64], index: 15, kind: input, shape index: {}]   ;;  %s5007_s16 = inlined_call_operand.vmem [shape: f32[2,1,64], index: 16, kind: input, shape index: {}]   ;;  %s5008_s17 = inlined_call_operand.vmem [shape: f32[2,64,32], index: 17, kind: input, shape index: {}]   ;;  %s5009_s18 = inlined_call_operand.vmem [shape: f32[2,1,32], index: 18, kind: input, shape index: {}]   ;;  %s5010_s19 = inlined_call_operand.hbm [shape: f32[2,16,32], index: 19, kind: output, shape index: {}]  }
   0x1   :  { %5041 = sst [smem:[#allocation10_spill]] %s4991_s0 }
   0x2   :  { %5042 = sst [smem:[#allocation11_spill]] %s4992_s1 }
   0x3   :  { %5043 = sst [smem:[#allocation12_spill]] %s4993_s2 }
   0x4   :  { %5044 = sst [smem:[#allocation13_spill]] %s4994_s3 }
   0x5   :  { %5045 = sst [smem:[#allocation14_spill]] %s4995_s4 }
   0x6   :  { %5046 = sst [smem:[#allocation15_spill]] %s4996_s5 }
   0x7   :  { %24 = vsyncpa [#allocation3], 0 }
   0x8   :  { %26 = vsyncpa [#allocation3 + $0x1], 0  ;;  %s4355_s0 = smov 0   ;;  %s4357_s30 = smov 0  }
   0x9   :  { %s4359_s20 = smov 0   ;;  %s4361_s21 = smov 0  }
   0xa LB: > { %5047 = sst [smem:[#allocation5_spill]] %s4225_s0  ;;  %s4376_s1 = sadd.s32 4294967295, %s4237_s21   ;;  %s4237_s21 = sphi %s4361_s21, %s5074_s21   ;;  %s4233_s20 = sphi %s4359_s20, %s5076_s20   ;;  %s4229_s30 = sphi %s4357_s30, %s5078_s30   ;;  %s4225_s0 = sphi %s4355_s0, %s5077_s0  }
   0xb   : > { %5048 = sst [smem:[#allocation6_spill]] %s4233_s20  ;;  %s3537_s22 = sadd.s32 4294967294, %s4237_s21  }
   0xc   : > { %s4380_s2 = sadd.s32 1, %s4237_s21   ;;  %s443_s23 = sadd.s32 1, %s4233_s20 }
   0xd   : > { %5049 = sst [smem:[#allocation7_spill]] %s4380_s2  ;;  %s440_s24 = ssub.s32 %s4237_s21, %s4380_s2 }
   0xe   : > { %p453_p0 = scmp.ne.s32.totalorder %s4233_s20, %s4229_s30  ;;  %p441_p1 = scmp.eq.s32.totalorder %s440_s24, 0 }
   0xf   : > { %p454_p2 = scmp.eq.s32.totalorder %s4376_s1, 1  ;;  %p459_p3 = scmp.ne.s32.totalorder %s4229_s30, %s4225_s0 }
  0x10   : > { %p460_p4 = scmp.eq.s32.totalorder %s3537_s22, 1  ;;  %p3540_p7 = scmp.ge.s32.totalorder %s4237_s21, 1 }
  0x11   : > { %s4391_s25 = scalar_select %p441_p1, %s4233_s20, %s443_s23  }
  0x12   : > { %p4393_p5 = por %p454_p2, %p453_p0  ;;  %p4397_p6 = por %p460_p4, %p459_p3 }
  0x13   : > { %5050 = sst [smem:[#allocation8_spill]] %s4391_s25  ;;  %p540_p8 = scmp.lt.s32.totalorder %s4237_s21, 3 }
  0x14   : > { %s5052_s26 = scalar_select %p4397_p6, 1, 0 }
  0x15   : > { %p541_p9 = pnand %p3540_p7, %p540_p8 }
  0x16   : > { %5053 = sst [smem:[#allocation9_spill]] %s5052_s26  ;;  %p596_p10 = scmp.lt.s32.totalorder (!%p541_p9), %s4376_s1, 1 }
  0x17   : > { %544 = sbr.rel (%p541_p9) target bundleno = 8105 (0x1fa9), region = 96  ;;  %s5054_s29 = sld [smem:[#allocation11_spill]] (!%p541_p9) }
  0x18   : > { %s5055_s26 = sld [smem:[#allocation10_spill]] (!%p541_p9)  ;;  %s5037_s20 = smov (!%p541_p9), 88  }
  0x19   : > { %s5056_s22 = sld [smem:[#allocation12_spill]] (!%p541_p9)  ;;  %s4242_s2 = smov (!%p541_p9), 120  }
  0x1a   : > { %s5057_s5 = sld [smem:[#allocation15_spill]] (!%p541_p9)  ;;  %s5029_s23 = smov (!%p541_p9), 112  }
  0x1b   : > { %s5059_s4 = sld [smem:[#allocation14_spill]] (!%p541_p9)  ;;  %s5019_s27 = smov (!%p541_p9), 72  }
  0x1c   : > { %s597_s24 = scalar_select %p596_p10, %s4376_s1, 1  ;;  %vm612_vm0 = vcmask 130048   ;;  %vm696_vm1 = vcmask 261120   ;;  %v3549_v41 = vld [vmem:[%s4997_s6] ss:$0 sm:$0xff]  ;;  %v879_v58 = vld [vmem:[%s5000_s9 + $0x18] sm:$0xff] }
  0x1d   : > { %v604_v0 = vld [vmem:[%s5054_s29 + $0x8] sm:$0xff]  ;;  %v603_v1 = vld [vmem:[%s5054_s29] sm:$0xff]  ;;  %v878_v59 = vld [vmem:[%s5000_s9 + $0x10] sm:$0xff]  ;;  %vm976_vm2 = vcmask 64512   ;;  %s5017_s28 = smov 104   ;;  %vm1799_vm3 = vcmask 195584  }
  0x1e   : > { %3797 = vmatprep.subr.mxu0 %v604_v0  ;;  %s3665_s25 = sshll.u32 %s597_s24, 4  ;;  %v877_v60 = vld [vmem:[%s5000_s9 + $0x8] sm:$0xff]  ;;  %v876_v61 = vld [vmem:[%s5000_s9] sm:$0xff]  ;;  %s5021_s24 = smov 48   ;;  %vm2057_vm4 = vcmask 523264  }
  0x1f   : > { %3798 = vmatpush3.msra.mxu0 %v604_v0  ;;  %s600_s0 = scalar_lea.vmem %s5055_s26, %s3665_s25  ;;  %v3544_v5 = vld [vmem:[%s5056_s22] ss:$0 sm:$0xff]  ;;  %s4239_s22 = smov 96  }
  0x20   : > { %3799 = vmatprep.subr.mxu0 %v603_v1  ;;  %v601_v2 = vld [vmem:[%s600_s0] sm:$0xff]  ;;  %v602_v3 = vld [vmem:[%s600_s0 + $0x8] sm:$0xff]  ;;  %v743_v21 = vld [vmem:[%s5057_s5 + $0x18] sm:$0xff]  ;;  %s5058_s0 = sld [smem:[#allocation13_spill]]  ;;  %s5033_s25 = smov 56  }
  0x21   : > { %3800 = vmatpush3.msra.mxu0 %v603_v1  ;;  %3801 = vmatprep.mubr.msk.f32.mxu0 %vm612_vm0, %v601_v2  ;;  %v742_v22 = vld [vmem:[%s5057_s5 + $0x10] sm:$0xff]  ;;  %v741_v23 = vld [vmem:[%s5057_s5 + $0x8] sm:$0xff]  ;;  %v740_v24 = vld [vmem:[%s5057_s5] sm:$0xff]  ;;  %s5031_s26 = smov 80  }
  0x22   : > { %3802 = vmatmul.mubr.msk.f32.vlgmr.msra.gmra.mxu0 %vm612_vm0, %v602_v3  ;;  %3804 = vmatprep.subr.mxu0 %v743_v21  ;;  %v3548_v34 = vld [vmem:[%s5059_s4] ss:$0 sm:$0xff] }
  0x23   : > { %3805 = vmatpush3.msra.mxu0 %v743_v21 }
  0x24   : > { %3806 = vmatprep.subr.mxu0 %v742_v22 }
  0x25   : > { %3807 = vmatpush3.msra.mxu0 %v742_v22 }
  0x26   : > { %3808 = vmatprep.subr.mxu0 %v741_v23  ;;  %v3547_v32 = vld [vmem:[%s5058_s0] ss:$0 sm:$0xff]  ;;  %s5035_s0 = smov 64  }
  0x27   : > { %3809 = vmatpush3.msra.mxu0 %v741_v23 }
  0x28   : > { %3810 = vmatprep.subr.mxu0 %v740_v24 }
  0x29   : > { %3811 = vmatpush3.msra.mxu0 %v740_v24 }
  0x2a   : > { %3815 = vmatprep.subr.mxu0 %v879_v58 }
  0xe2   : > { %v3803_v4 = vpop.f32.mrf.mxu0 }
  0xe3   : > { %v691_v8 = vadd.f32 %v3803_v4, %v3544_v5 }
  0xe4   : > { %v685_v6 = vpop.f32.mrf.mxu0 }
  0xe5   : > { %v686_v7 = vadd.f32 %v3544_v5, %v685_v6  ;;  %v700_v10 = vsel %vm696_vm1, %v691_v8, 0.0  ;;  %v3552_v5 = vld [vmem:[%s4998_s7] ss:$0 sm:$0xff] }
  0xe7   : > { %v697_v9 = vsel %vm696_vm1, %v686_v7, 0.0 }
  0xe8   : > { %698 = vadd.xlane.f32.xlu0 %v697_v9 }
  0xec   : > { %701 = vadd.xlane.f32.xlu0 %v700_v10  ;;  %v3553_v10 = vld [vmem:[%s4999_s8] ss:$0 sm:$0xff] }
 0x171   : > { %v699_v11 = vpop.xlane.xlu0 %698 }
 0x172   : > { %v704_v12 = vmul.f32 0.03125, %v699_v11 }
 0x174   : > { %v706_v13 = vsub.f32 %v686_v7, %v704_v12 }
 0x175   : > { %v702_v14 = vpop.xlane.xlu0 %701 }
 0x176   : > { %v705_v15 = vmul.f32 0.03125, %v702_v14  ;;  %v708_v16 = vmul.f32 %v706_v13, %v706_v13  ;;  %v3554_v14 = vld [vmem:[%s5001_s10] ss:$0 sm:$0xff] }
 0x178   : > { %v707_v17 = vsub.f32 %v691_v8, %v705_v15  ;;  %v710_v18 = vsel %vm696_vm1, %v708_v16, 0.0 }
 0x179   : > { %711 = vadd.xlane.f32.xlu1 %v710_v18 }
 0x17a   : > { %v709_v19 = vmul.f32 %v707_v17, %v707_v17 }
 0x17c   : > { %v713_v20 = vsel %vm696_vm1, %v709_v19, 0.0 }
 0x17d   : > { %714 = vadd.xlane.f32.xlu1 %v713_v20 }
 0x202   : > { %v712_v25 = vpop.xlane.xlu1 %711 }
 0x203   : > { %v716_v26 = vmul.f32 0.03125, %v712_v25 }
 0x205   : > { %v718_v27 = vadd.f32 1e-05, %v716_v26 }
 0x206   : > { %v715_v28 = vpop.xlane.xlu1 %714 }
 0x207   : > { %4085 = vrsqrt.f32 %v718_v27  ;;  %v717_v29 = vmul.f32 0.03125, %v715_v28 }
 0x209   : > { %v719_v30 = vadd.f32 1e-05, %v717_v29 }
 0x20b   : > { %4087 = vrsqrt.f32 %v719_v30 }
 0x214   : > { %v4086_v31 = vpop.eup %4085 }
 0x215   : > { %v722_v33 = vmul.f32 %v4086_v31, %v706_v13 }
 0x217   : > { %v730_v35 = vmul.f32 %v3547_v32, %v722_v33 }
 0x218   : > { %v4088_v36 = vpop.eup %4087 }
 0x219   : > { %v723_v37 = vmul.f32 %v4088_v36, %v707_v17  ;;  %v738_v38 = vadd.f32 %v3548_v34, %v730_v35 }
 0x21b   : > { %v731_v39 = vmul.f32 %v3547_v32, %v723_v37  ;;  %3812 = vmatprep.mubr.msk.f32.mxu0 %vm696_vm1, %v738_v38 }
 0x21d   : > { %v739_v40 = vadd.f32 %v3548_v34, %v731_v39 }
 0x21f   : > { %3813 = vmatmul.mubr.msk.f32.vlgmr.msra.gmra.mxu0 %vm696_vm1, %v739_v40 }
 0x220   : > { %3816 = vmatpush3.msra.mxu0 %v879_v58 }
 0x221   : > { %3817 = vmatprep.subr.mxu0 %v878_v59 }
 0x222   : > { %3818 = vmatpush3.msra.mxu0 %v878_v59 }
 0x223   : > { %3819 = vmatprep.subr.mxu0 %v877_v60 }
 0x224   : > { %3820 = vmatpush3.msra.mxu0 %v877_v60 }
 0x225   : > { %3821 = vmatprep.subr.mxu0 %v876_v61 }
 0x226   : > { %3822 = vmatpush3.msra.mxu0 %v876_v61 }
 0x2df   : > { %v3814_v42 = vpop.f32.mrf.mxu0 }
 0x2e0   : > { %v4446_v43 = vadd.f32 %v3814_v42, %v3549_v41 }
 0x2e1   : > { %v823_v44 = vpop.f32.mrf.mxu0 }
 0x2e2   : > { %v4448_v45 = vadd.f32 %v3549_v41, %v823_v44  ;;  %v837_v46 = vsel %vm696_vm1, %v4446_v43, 0.0 }
 0x2e3   : > { %838 = vadd.xlane.f32.xlu1 %v837_v46 }
 0x2e4   : > { %v834_v47 = vsel %vm696_vm1, %v4448_v45, 0.0 }
 0x2e5   : > { %835 = vadd.xlane.f32.xlu0 %v834_v47 }
 0x36c   : > { %v839_v48 = vpop.xlane.xlu1 %838 }
 0x36d   : > { %v841_v49 = vmul.f32 0.03125, %v839_v48 }
 0x36e   : > { %v836_v50 = vpop.xlane.xlu0 %835 }
 0x36f   : > { %v843_v51 = vsub.f32 %v4446_v43, %v841_v49  ;;  %v840_v52 = vmul.f32 0.03125, %v836_v50 }
 0x371   : > { %v842_v53 = vsub.f32 %v4448_v45, %v840_v52  ;;  %v845_v54 = vmul.f32 %v843_v51, %v843_v51 }
 0x373   : > { %v849_v55 = vsel %vm696_vm1, %v845_v54, 0.0  ;;  %v844_v56 = vmul.f32 %v842_v53, %v842_v53 }
 0x374   : > { %850 = vadd.xlane.f32.xlu1 %v849_v55 }
 0x375   : > { %v846_v57 = vsel %vm696_vm1, %v844_v56, 0.0 }
 0x376   : > { %847 = vadd.xlane.f32.xlu0 %v846_v57 }
 0x3fd   : > { %v851_v62 = vpop.xlane.xlu1 %850 }
 0x3fe   : > { %v853_v63 = vmul.f32 0.03125, %v851_v62 }
 0x3ff   : > { %v848_v0 = vpop.xlane.xlu0 %847 }
 0x400   : > { %v855_v1 = vadd.f32 1e-05, %v853_v63  ;;  %v852_v2 = vmul.f32 0.03125, %v848_v0 }
 0x402   : > { %4089 = vrsqrt.f32 %v855_v1  ;;  %v854_v3 = vadd.f32 1e-05, %v852_v2 }
 0x404   : > { %4091 = vrsqrt.f32 %v854_v3 }
 0x40f   : > { %v4090_v4 = vpop.eup %4089 }
 0x410   : > { %v859_v6 = vmul.f32 %v4090_v4, %v843_v51 }
 0x411   : > { %v4092_v7 = vpop.eup %4091 }
 0x412   : > { %v858_v8 = vmul.f32 %v4092_v7, %v842_v53  ;;  %v867_v9 = vmul.f32 %v3552_v5, %v859_v6 }
 0x414   : > { %v866_v11 = vmul.f32 %v3552_v5, %v858_v8  ;;  %v875_v13 = vadd.f32 %v3553_v10, %v867_v9 }
 0x416   : > { %v874_v12 = vadd.f32 %v3553_v10, %v866_v11 }
 0x418   : > { %3823 = vmatprep.mubr.msk.f32.mxu0 %vm696_vm1, %v874_v12 }
 0x419   : > { %3824 = vmatmul.mubr.msk.f32.vlgmr.msra.gmra.mxu0 %vm696_vm1, %v875_v13 }
 0x4d9   : > { %v3825_v15 = vpop.f32.mrf.mxu0 }
 0x4da   : > { %v4481_v16 = vadd.f32 %v3825_v15, %v3554_v14 }
 0x4db   : > { %v959_v17 = vpop.f32.mrf.mxu0 }
 0x4dc   : > { %v4483_v18 = vadd.f32 %v3554_v14, %v959_v17  ;;  %974 = vrot.lane.b32.xlu0 %v4481_v16, %s4239_s22  ;;  %v4499_v22 = vmul.f32 0.35355338, %v4481_v16 }
 0x4de   : > { %972 = vrot.lane.b32.xlu1 %v4483_v18, %s4239_s22  ;;  %v4490_v19 = vmul.f32 0.35355338, %v4483_v18 }
 0x4e0   : > { %3830 = vmatprep.mubr.msk.f32.mxu1 %vm976_vm2, %v4490_v19 }
 0x54e   : > { %v975_v20 = vpop.permute.xlu0 %974 }
 0x54f   : > { %3826 = vmatprep.subr.msk.mxu1 %vm976_vm2, %v975_v20 }
 0x550   : > { %3827 = vmatpush3.xpose.msk.msra.mxu1 %vm976_vm2, %v975_v20  ;;  %v973_v21 = vpop.permute.xlu1 %972 }
 0x551   : > { %3828 = vmatprep.subr.msk.mxu1 %vm976_vm2, %v973_v21 }
 0x554   : > { %3829 = vmatpush3.xpose.msk.msra.mxu1 %vm976_vm2, %v973_v21 }
 0x557   : > { %3831 = vmatmul.mubr.msk.f32.vlgmr.msra.gmra.mxu1 %vm976_vm2, %v4499_v22 }
 0x617   : > { %v3832_v23 = vpop.f32.mrf.mxu1 }
 0x618   : > { %v1065_v24 = vsel %vm612_vm0, %v3832_v23, -inf }
 0x619   : > { %1066 = vmax.xlane.f32.xlu0 %v1065_v24  ;;  %v1053_v25 = vpop.f32.mrf.mxu1 }
 0x61a   : > { %v1062_v26 = vsel %vm612_vm0, %v1053_v25, -inf }
 0x61b   : > { %1063 = vmax.xlane.f32.xlu1 %v1062_v26 }
 0x6a2   : > { %v1067_v27 = vpop.xlane.xlu0 %1066 }
 0x6a3   : > { %v1069_v28 = vsub.f32 %v3832_v23, %v1067_v27 }
 0x6a4   : > { %v1064_v29 = vpop.xlane.xlu1 %1063 }
 0x6a5   : > { %v1072_v30 = vmul.f32 1.442695, %v1069_v28  ;;  %v1068_v31 = vsub.f32 %v1053_v25, %v1064_v29 }
 0x6a7   : > { %4093 = vpow2.f32 %v1072_v30  ;;  %v1070_v32 = vmul.f32 1.442695, %v1068_v31 }
 0x6a9   : > { %4095 = vpow2.f32 %v1070_v32 }
 0x6b4   : > { %v4094_v33 = vpop.eup %4093 }
 0x6b5   : > { %v1077_v34 = vsel %vm612_vm0, %v4094_v33, 0.0 }
 0x6b6   : > { %v4096_v35 = vpop.eup %4095  ;;  %1078 = vadd.xlane.f32.xlu1 %v1077_v34 }
 0x6b7   : > { %v1074_v36 = vsel %vm612_vm0, %v4096_v35, 0.0 }
 0x6b8   : > { %1075 = vadd.xlane.f32.xlu0 %v1074_v36 }
 0x6c7   : > { %1084 = vrot.lane.b32.xlu1 %v4483_v18, %s5035_s0 }
 0x6cb   : > { %1177 = vrot.lane.b32.xlu1 %v4481_v16, %s5037_s20 }
 0x6ce   : > { %1086 = vrot.lane.b32.xlu0 %v4481_v16, %s5035_s0  ;;  %s5060_s0 = smov 88  }
 0x6cf   : > { %1175 = vrot.lane.b32.xlu1 %v4483_v18, %s5037_s20  ;;  %s5063_s20 = smov 80  }
 0x6d2   : > { %1171 = vrot.lane.b32.xlu0 %v4490_v19, %s4242_s2 }
 0x6d3   : > { %1173 = vrot.lane.b32.xlu1 %v4499_v22, %s4242_s2 }
 0x73f   : > { %v1079_v37 = vpop.xlane.xlu1 %1078 }
 0x740   : > { %4097 = vrcp.f32 %v1079_v37 }
 0x741   : > { %v1076_v38 = vpop.xlane.xlu0 %1075 }
 0x742   : > { %4099 = vrcp.f32 %v1076_v38 }
 0x743   : > { %v1085_v39 = vpop.permute.xlu1 %1084 }
 0x745   : > { %v1087_v40 = vpop.permute.xlu0 %1086 }
 0x746   : > { %3833 = vmatprep.subr.mxu0 %v1087_v40 }
 0x747   : > { %3834 = vmatpush3.msra.mxu0 %v1087_v40  ;;  %v1178_v41 = vpop.permute.xlu1 %1177 }
 0x748   : > { %3835 = vmatprep.subr.mxu0 %v1085_v39 }
 0x749   : > { %3836 = vmatpush3.msra.mxu0 %v1085_v39  ;;  %v1172_v48 = vpop.permute.xlu0 %1171 }
 0x74a   : > { %3840 = vmatprep.subr.msk.mxu0 %vm976_vm2, %v1178_v41 }
 0x74b   : > { %v1176_v49 = vpop.permute.xlu1 %1175 }
 0x74d   : > { %v4098_v42 = vpop.eup %4097 }
 0x74e   : > { %v1083_v47 = vmul.f32 %v4098_v42, %v4094_v33 }
 0x74f   : > { %v4100_v44 = vpop.eup %4099  ;;  %v1174_v50 = vpop.permute.xlu1 %1173 }
 0x750   : > { %v1082_v46 = vmul.f32 %v4100_v44, %v4096_v35 }
 0x752   : > { %3837 = vmatprep.mubr.msk.f32.mxu0 %vm612_vm0, %v1082_v46 }
 0x753   : > { %3838 = vmatmul.mubr.msk.f32.vlgmr.msra.gmra.mxu0 %vm612_vm0, %v1083_v47 }
 0x754   : > { %3841 = vmatpush3.xpose.msk.msra.mxu0 %vm976_vm2, %v1178_v41  ;;  %3844 = vmatprep.mubr.msk.f32.mxu0 %vm976_vm2, %v1172_v48 }
 0x755   : > { %3842 = vmatprep.subr.msk.mxu0 %vm976_vm2, %v1176_v49 }
 0x758   : > { %3843 = vmatpush3.xpose.msk.msra.mxu0 %vm976_vm2, %v1176_v49 }
 0x75b   : > { %3845 = vmatmul.mubr.msk.f32.vlgmr.msra.gmra.mxu0 %vm976_vm2, %v1174_v50 }
 0x813   : > { %v4527_v51 = vpop.f32.mrf.mxu0 }
 0x815   : > { %v4529_v52 = vpop.f32.mrf.mxu0 }
 0x81b   : > { %v3846_v53 = vpop.f32.mrf.mxu0 }
 0x81c   : > { %v1265_v54 = vsel %vm612_vm0, %v3846_v53, -inf }
 0x81d   : > { %1266 = vmax.xlane.f32.xlu1 %v1265_v54  ;;  %v1253_v55 = vpop.f32.mrf.mxu0 }
 0x81e   : > { %v1262_v56 = vsel %vm612_vm0, %v1253_v55, -inf }
 0x81f   : > { %1263 = vmax.xlane.f32.xlu0 %v1262_v56 }
 0x82e   : > { %1284 = vrot.lane.b32.xlu1 %v4483_v18, %s5033_s25 }
 0x832   : > { %1377 = vrot.lane.b32.xlu1 %v4481_v16, %s5031_s26 }
 0x836   : > { %1375 = vrot.lane.b32.xlu1 %v4483_v18, %s5031_s26  ;;  %s5065_s26 = smov 48  }
 0x83a   : > { %1373 = vrot.lane.b32.xlu1 %v4499_v22, %s5029_s23 }
 0x8a6   : > { %v1267_v57 = vpop.xlane.xlu1 %1266 }
 0x8a7   : > { %v1269_v58 = vsub.f32 %v3846_v53, %v1267_v57 }
 0x8a8   : > { %v1264_v59 = vpop.xlane.xlu0 %1263 }
 0x8a9   : > { %v1272_v60 = vmul.f32 1.442695, %v1269_v58  ;;  %v1268_v61 = vsub.f32 %v1253_v55, %v1264_v59 }
 0x8aa   : > { %v1285_v5 = vpop.permute.xlu1 %1284 }
 0x8ab   : > { %4101 = vpow2.f32 %v1272_v60  ;;  %v1270_v62 = vmul.f32 1.442695, %v1268_v61 }
 0x8ad   : > { %4103 = vpow2.f32 %v1270_v62 }
 0x8ae   : > { %v1378_v7 = vpop.permute.xlu1 %1377 }
 0x8b2   : > { %v1376_v13 = vpop.permute.xlu1 %1375 }
 0x8b6   : > { %v1374_v14 = vpop.permute.xlu1 %1373 }
 0x8b8   : > { %v4102_v63 = vpop.eup %4101 }
 0x8b9   : > { %v1277_v0 = vsel %vm612_vm0, %v4102_v63, 0.0 }
 0x8ba   : > { %v4104_v1 = vpop.eup %4103  ;;  %1278 = vadd.xlane.f32.xlu0 %v1277_v0 }
 0x8bb   : > { %v1274_v2 = vsel %vm612_vm0, %v4104_v1, 0.0 }
 0x8be   : > { %1275 = vadd.xlane.f32.xlu0 %v1274_v2 }
 0x8d4   : > { %1286 = vrot.lane.b32.xlu0 %v4481_v16, %s5033_s25  ;;  %s5064_s25 = smov 112  }
 0x8d8   : > { %1371 = vrot.lane.b32.xlu0 %v4490_v19, %s5029_s23  ;;  %s5066_s23 = smov 72  }
 0x943   : > { %v1279_v3 = vpop.xlane.xlu0 %1278 }
 0x944   : > { %4105 = vrcp.f32 %v1279_v3 }
 0x947   : > { %v1276_v4 = vpop.xlane.xlu0 %1275 }
 0x948   : > { %4107 = vrcp.f32 %v1276_v4 }
 0x94b   : > { %v1287_v6 = vpop.permute.xlu0 %1286 }
 0x94c   : > { %3847 = vmatprep.subr.mxu1 %v1287_v6 }
 0x94d   : > { %3848 = vmatpush3.msra.mxu1 %v1287_v6 }
 0x94e   : > { %3849 = vmatprep.subr.mxu1 %v1285_v5 }
 0x94f   : > { %3850 = vmatpush3.msra.mxu1 %v1285_v5  ;;  %v1372_v12 = vpop.permute.xlu0 %1371 }
 0x950   : > { %3854 = vmatprep.subr.msk.mxu1 %vm976_vm2, %v1378_v7 }
 0x951   : > { %v4106_v8 = vpop.eup %4105 }
 0x952   : > { %v1283_v11 = vmul.f32 %v4106_v8, %v4102_v63  ;;  %v1804_v8 = vld [vmem:[%s5002_s11 + $0x10] sm:$0xff] }
 0x955   : > { %v4108_v9 = vpop.eup %4107 }
 0x956   : > { %v1282_v10 = vmul.f32 %v4108_v9, %v4104_v1  ;;  %v1803_v9 = vld [vmem:[%s5002_s11 + $0x8] sm:$0xff] }
 0x958   : > { %3851 = vmatprep.mubr.msk.f32.mxu1 %vm612_vm0, %v1282_v10  ;;  %v1802_v10 = vld [vmem:[%s5002_s11] sm:$0xff] }
 0x959   : > { %3852 = vmatmul.mubr.msk.f32.vlgmr.msra.gmra.mxu1 %vm612_vm0, %v1283_v11 }
 0x95a   : > { %3855 = vmatpush3.xpose.msk.msra.mxu1 %vm976_vm2, %v1378_v7  ;;  %3858 = vmatprep.mubr.msk.f32.mxu1 %vm976_vm2, %v1372_v12 }
 0x95b   : > { %3856 = vmatprep.subr.msk.mxu1 %vm976_vm2, %v1376_v13 }
 0x95e   : > { %3857 = vmatpush3.xpose.msk.msra.mxu1 %vm976_vm2, %v1376_v13 }
 0x961   : > { %3859 = vmatmul.mubr.msk.f32.vlgmr.msra.gmra.mxu1 %vm976_vm2, %v1374_v14 }
 0xa19   : > { %v4555_v15 = vpop.f32.mrf.mxu1 }
 0xa1b   : > { %v4557_v17 = vpop.f32.mrf.mxu1 }
 0xa21   : > { %v3860_v20 = vpop.f32.mrf.mxu1 }
 0xa22   : > { %v1465_v21 = vsel %vm612_vm0, %v3860_v20, -inf }
 0xa23   : > { %1466 = vmax.xlane.f32.xlu1 %v1465_v21  ;;  %v1453_v23 = vpop.f32.mrf.mxu1 }
 0xa24   : > { %v1462_v24 = vsel %vm612_vm0, %v1453_v23, -inf }
 0xa25   : > { %1463 = vmax.xlane.f32.xlu0 %v1462_v24 }
 0xa34   : > { %1484 = vrot.lane.b32.xlu1 %v4483_v18, %s5021_s24 }
 0xa38   : > { %1577 = vrot.lane.b32.xlu1 %v4481_v16, %s5019_s27 }
 0xa3c   : > { %1575 = vrot.lane.b32.xlu1 %v4483_v18, %s5019_s27  ;;  %s5023_s27 = smov 8  }
 0xa40   : > { %1573 = vrot.lane.b32.xlu1 %v4499_v22, %s5017_s28 }
 0xaac   : > { %v1467_v25 = vpop.xlane.xlu1 %1466 }
 0xaad   : > { %v1469_v26 = vsub.f32 %v3860_v20, %v1467_v25 }
 0xaae   : > { %v1464_v27 = vpop.xlane.xlu0 %1463 }
 0xaaf   : > { %v1472_v28 = vmul.f32 1.442695, %v1469_v26  ;;  %v1468_v29 = vsub.f32 %v1453_v23, %v1464_v27 }
 0xab0   : > { %v1485_v36 = vpop.permute.xlu1 %1484 }
 0xab1   : > { %4109 = vpow2.f32 %v1472_v28  ;;  %v1470_v30 = vmul.f32 1.442695, %v1468_v29 }
 0xab3   : > { %4111 = vpow2.f32 %v1470_v30 }
 0xab4   : > { %v1578_v38 = vpop.permute.xlu1 %1577 }
 0xab8   : > { %v1576_v44 = vpop.permute.xlu1 %1575 }
 0xabc   : > { %v1574_v46 = vpop.permute.xlu1 %1573 }
 0xabe   : > { %v4110_v31 = vpop.eup %4109 }
 0xabf   : > { %v1477_v32 = vsel %vm612_vm0, %v4110_v31, 0.0 }
 0xac0   : > { %v4112_v33 = vpop.eup %4111  ;;  %1478 = vadd.xlane.f32.xlu0 %v1477_v32 }
 0xac1   : > { %v1474_v34 = vsel %vm612_vm0, %v4112_v33, 0.0 }
 0xac4   : > { %1475 = vadd.xlane.f32.xlu0 %v1474_v34 }
 0xada   : > { %1486 = vrot.lane.b32.xlu0 %v4481_v16, %s5021_s24  ;;  %s5025_s24 = smov 16  }
 0xade   : > { %1571 = vrot.lane.b32.xlu0 %v4490_v19, %s5017_s28  ;;  %s5027_s28 = smov 40  }
 0xb49   : > { %v1479_v22 = vpop.xlane.xlu0 %1478 }
 0xb4a   : > { %4113 = vrcp.f32 %v1479_v22 }
 0xb4d   : > { %v1476_v35 = vpop.xlane.xlu0 %1475 }
 0xb4e   : > { %4115 = vrcp.f32 %v1476_v35 }
 0xb51   : > { %v1487_v37 = vpop.permute.xlu0 %1486 }
 0xb52   : > { %3861 = vmatprep.subr.mxu0 %v1487_v37 }
 0xb53   : > { %3862 = vmatpush3.msra.mxu0 %v1487_v37 }
 0xb54   : > { %3863 = vmatprep.subr.mxu0 %v1485_v36 }
 0xb55   : > { %3864 = vmatpush3.msra.mxu0 %v1485_v36  ;;  %v1572_v19 = vpop.permute.xlu0 %1571 }
 0xb56   : > { %3868 = vmatprep.subr.msk.mxu0 %vm976_vm2, %v1578_v38 }
 0xb57   : > { %v4114_v39 = vpop.eup %4113 }
 0xb58   : > { %v1483_v42 = vmul.f32 %v4114_v39, %v4110_v31 }
 0xb5b   : > { %v4116_v40 = vpop.eup %4115 }
 0xb5c   : > { %v1482_v41 = vmul.f32 %v4116_v40, %v4112_v33 }
 0xb5e   : > { %3865 = vmatprep.mubr.msk.f32.mxu0 %vm612_vm0, %v1482_v41 }
 0xb5f   : > { %3866 = vmatmul.mubr.msk.f32.vlgmr.msra.gmra.mxu0 %vm612_vm0, %v1483_v42 }
 0xb60   : > { %3869 = vmatpush3.xpose.msk.msra.mxu0 %vm976_vm2, %v1578_v38  ;;  %3872 = vmatprep.mubr.msk.f32.mxu0 %vm976_vm2, %v1572_v19  ;;  %v1943_v19 = vld [vmem:[%s5006_s15 + $0x18] sm:$0xff] }
 0xb61   : > { %3870 = vmatprep.subr.msk.mxu0 %vm976_vm2, %v1576_v44 }
 0xb64   : > { %3871 = vmatpush3.xpose.msk.msra.mxu0 %vm976_vm2, %v1576_v44  ;;  %v1942_v44 = vld [vmem:[%s5006_s15 + $0x10] sm:$0xff] }
 0xb65   : > { %3893 = vmatprep.subr.mxu0 %v1943_v19 }
 0xb67   : > { %3873 = vmatmul.mubr.msk.f32.vlgmr.msra.gmra.mxu0 %vm976_vm2, %v1574_v46  ;;  %v1941_v46 = vld [vmem:[%s5006_s15 + $0x8] sm:$0xff] }
 0xb68   : > { %3894 = vmatpush3.msra.mxu0 %v1943_v19  ;;  %v3597_v19 = vld [vmem:[%s5000_s9 + $0x28] sm:$0xff] }
 0xb69   : > { %3895 = vmatprep.subr.mxu0 %v1942_v44 }
 0xb6a   : > { %3896 = vmatpush3.msra.mxu0 %v1942_v44  ;;  %v3596_v44 = vld [vmem:[%s5000_s9 + $0x20] sm:$0xff] }
 0xb6b   : > { %3897 = vmatprep.subr.mxu0 %v1941_v46 }
 0xb6c   : > { %3898 = vmatpush3.msra.mxu0 %v1941_v46 }
 0xc1f   : > { %v3867_v47 = vpop.f32.mrf.mxu0 }
 0xc21   : > { %v1562_v48 = vpop.f32.mrf.mxu0 }
 0xc27   : > { %v3874_v49 = vpop.f32.mrf.mxu0 }
 0xc28   : > { %v1665_v50 = vsel %vm612_vm0, %v3874_v49, -inf }
 0xc29   : > { %1666 = vmax.xlane.f32.xlu1 %v1665_v50  ;;  %v1653_v53 = vpop.f32.mrf.mxu0 }
 0xc2a   : > { %v1662_v54 = vsel %vm612_vm0, %v1653_v53, -inf }
 0xc2b   : > { %1663 = vmax.xlane.f32.xlu0 %v1662_v54 }
 0xc3a   : > { %1684 = vrot.lane.b32.xlu1 %v4483_v18, %s5027_s28 }
 0xc3e   : > { %1773 = vrot.lane.b32.xlu1 %v4557_v17, %s5023_s27 }
 0xc42   : > { %1775 = vrot.lane.b32.xlu1 %v4555_v15, %s5023_s27  ;;  %s5067_s27 = smov 104  }
 0xc46   : > { %1783 = vrot.lane.b32.xlu1 %v3867_v47, %s5025_s24  ;;  %v1940_v47 = vld [vmem:[%s5006_s15] sm:$0xff] }
 0xc47   : > { %3899 = vmatprep.subr.mxu0 %v1940_v47 }
 0xc48   : > { %3900 = vmatpush3.msra.mxu0 %v1940_v47 }
 0xcb2   : > { %v1667_v55 = vpop.xlane.xlu1 %1666 }
 0xcb3   : > { %v1669_v56 = vsub.f32 %v3874_v49, %v1667_v55 }
 0xcb4   : > { %v1664_v57 = vpop.xlane.xlu0 %1663 }
 0xcb5   : > { %v1672_v58 = vmul.f32 1.442695, %v1669_v56  ;;  %v1668_v59 = vsub.f32 %v1653_v53, %v1664_v57  ;;  %v3584_v57 = vld [vmem:[%s5004_s13] ss:$0 sm:$0xff] }
 0xcb6   : > { %v1685_v3 = vpop.permute.xlu1 %1684 }
 0xcb7   : > { %4117 = vpow2.f32 %v1672_v58  ;;  %v1670_v60 = vmul.f32 1.442695, %v1668_v59  ;;  %v3585_v59 = vld [vmem:[%s5005_s14] ss:$0 sm:$0xff] }
 0xcb9   : > { %4119 = vpow2.f32 %v1670_v60 }
 0xcba   : > { %v1774_v13 = vpop.permute.xlu1 %1773 }
 0xcbb   : > { %v1795_v20 = vsel %vm976_vm2, %v4529_v52, %v1774_v13  ;;  %v3581_v52 = vld [vmem:[%s5003_s12] ss:$0 sm:$0xff] }
 0xcbe   : > { %v1776_v14 = vpop.permute.xlu1 %1775 }
 0xcbf   : > { %v1796_v23 = vsel %vm976_vm2, %v4527_v51, %v1776_v14 }
 0xcc2   : > { %v1784_v15 = vpop.permute.xlu1 %1783 }
 0xcc3   : > { %v1798_v26 = vsel %vm612_vm0, %v1796_v23, %v1784_v15 }
 0xcc4   : > { %v4118_v61 = vpop.eup %4117 }
 0xcc5   : > { %v1677_v18 = vsel %vm612_vm0, %v4118_v61, 0.0 }
 0xcc6   : > { %v4120_v62 = vpop.eup %4119  ;;  %1678 = vadd.xlane.f32.xlu0 %v1677_v18 }
 0xcc7   : > { %v1674_v63 = vsel %vm612_vm0, %v4120_v62, 0.0 }
 0xcca   : > { %1675 = vadd.xlane.f32.xlu0 %v1674_v63 }
 0xce0   : > { %1686 = vrot.lane.b32.xlu0 %v4481_v16, %s5027_s28  ;;  %v1805_v16 = vld [vmem:[%s5002_s11 + $0x18] sm:$0xff]  ;;  %s5069_s28 = smov 8  }
 0xce4   : > { %1781 = vrot.lane.b32.xlu0 %v1562_v48, %s5025_s24  ;;  %s5039_s24 = smov 24  }
 0xd4f   : > { %v1679_v0 = vpop.xlane.xlu0 %1678 }
 0xd50   : > { %4121 = vrcp.f32 %v1679_v0 }
 0xd53   : > { %v1676_v1 = vpop.xlane.xlu0 %1675 }
 0xd54   : > { %4123 = vrcp.f32 %v1676_v1  ;;  %v2049_v1 = vld [vmem:[%s5008_s17 + $0x38] sm:$0xff] }
 0xd57   : > { %v1687_v2 = vpop.permute.xlu0 %1686 }
 0xd58   : > { %3875 = vmatprep.subr.mxu1 %v1687_v2 }
 0xd59   : > { %3876 = vmatpush3.msra.mxu1 %v1687_v2  ;;  %v2048_v2 = vld [vmem:[%s5008_s17 + $0x30] sm:$0xff] }
 0xd5a   : > { %3877 = vmatprep.subr.mxu1 %v1685_v3 }
 0xd5b   : > { %3878 = vmatpush3.msra.mxu1 %v1685_v3  ;;  %v1782_v17 = vpop.permute.xlu0 %1781  ;;  %v2047_v3 = vld [vmem:[%s5008_s17 + $0x28] sm:$0xff] }
 0xd5c   : > { %3882 = vmatprep.subr.mxu1 %v1805_v16  ;;  %v1797_v24 = vsel %vm612_vm0, %v1795_v20, %v1782_v17 }
 0xd5d   : > { %v4122_v4 = vpop.eup %4121 }
 0xd5e   : > { %v1683_v7 = vmul.f32 %v4122_v4, %v4118_v61  ;;  %v2046_v4 = vld [vmem:[%s5008_s17 + $0x20] sm:$0xff] }
 0xd61   : > { %v4124_v5 = vpop.eup %4123 }
 0xd62   : > { %v1682_v6 = vmul.f32 %v4124_v5, %v4120_v62  ;;  %v2045_v5 = vld [vmem:[%s5008_s17 + $0x18] sm:$0xff] }
 0xd64   : > { %3879 = vmatprep.mubr.msk.f32.mxu1 %vm612_vm0, %v1682_v6  ;;  %v2044_v6 = vld [vmem:[%s5008_s17 + $0x10] sm:$0xff] }
 0xd65   : > { %3880 = vmatmul.mubr.msk.f32.vlgmr.msra.gmra.mxu1 %vm612_vm0, %v1683_v7  ;;  %v2043_v7 = vld [vmem:[%s5008_s17 + $0x8] sm:$0xff] }
 0xd66   : > { %3883 = vmatpush3.msra.mxu1 %v1805_v16  ;;  %v2042_v16 = vld [vmem:[%s5008_s17] sm:$0xff] }
 0xd67   : > { %3884 = vmatprep.subr.mxu1 %v1804_v8 }
 0xd68   : > { %3885 = vmatpush3.msra.mxu1 %v1804_v8  ;;  %v3586_v8 = vld [vmem:[%s5007_s16] ss:$0 sm:$0xff] }
 0xd69   : > { %3886 = vmatprep.subr.mxu1 %v1803_v9 }
 0xd6a   : > { %3887 = vmatpush3.msra.mxu1 %v1803_v9 }
 0xd6b   : > { %3888 = vmatprep.subr.mxu1 %v1802_v10 }
 0xd6c   : > { %3889 = vmatpush3.msra.mxu1 %v1802_v10 }
 0xd6d   : > { %3904 = vmatprep.subr.mxu1 %v2049_v1 }
 0xe25   : > { %v3881_v11 = vpop.f32.mrf.mxu1 }
 0xe26   : > { %1791 = vrot.lane.b32.xlu1 %v3881_v11, %s5039_s24 }
 0xe27   : > { %v1762_v12 = vpop.f32.mrf.mxu1 }
 0xe28   : > { %1789 = vrot.lane.b32.xlu0 %v1762_v12, %s5039_s24  ;;  %s5068_s24 = smov 40  }
 0xe98   : > { %v1792_v21 = vpop.permute.xlu1 %1791 }
 0xe99   : > { %v1801_v28 = vsel %vm1799_vm3, %v1798_v26, %v1792_v21 }
 0xe9a   : > { %v1790_v25 = vpop.permute.xlu0 %1789 }
 0xe9b   : > { %v1800_v27 = vsel %vm1799_vm3, %v1797_v24, %v1790_v25 }
 0xe9c   : > { %3890 = vmatprep.mubr.msk.f32.mxu1 %vm696_vm1, %v1800_v27  ;;  %v3589_v27 = vld [vmem:[%s5009_s18] ss:$0 sm:$0xff] }
 0xe9d   : > { %3891 = vmatmul.mubr.msk.f32.vlgmr.msra.gmra.mxu1 %vm696_vm1, %v1801_v28 }
 0xe9e   : > { %3905 = vmatpush3.msra.mxu1 %v2049_v1 }
 0xe9f   : > { %3906 = vmatprep.subr.mxu1 %v2048_v2 }
 0xea0   : > { %3907 = vmatpush3.msra.mxu1 %v2048_v2 }
 0xea1   : > { %3908 = vmatprep.subr.mxu1 %v2047_v3 }
 0xea2   : > { %3909 = vmatpush3.msra.mxu1 %v2047_v3 }
 0xea3   : > { %3910 = vmatprep.subr.mxu1 %v2046_v4 }
 0xea4   : > { %3911 = vmatpush3.msra.mxu1 %v2046_v4 }
 0xea5   : > { %3912 = vmatprep.subr.mxu1 %v2045_v5 }
 0xea6   : > { %3913 = vmatpush3.msra.mxu1 %v2045_v5 }
 0xea7   : > { %3914 = vmatprep.subr.mxu1 %v2044_v6 }
 0xea8   : > { %3915 = vmatpush3.msra.mxu1 %v2044_v6 }
 0xea9   : > { %3916 = vmatprep.subr.mxu1 %v2043_v7 }
 0xeaa   : > { %3917 = vmatpush3.msra.mxu1 %v2043_v7 }
 0xeab   : > { %3918 = vmatprep.subr.mxu1 %v2042_v16 }
 0xeac   : > { %3919 = vmatpush3.msra.mxu1 %v2042_v16 }
 0xf5d   : > { %v3892_v29 = vpop.f32.mrf.mxu1 }
 0xf5e   : > { %v1891_v30 = vadd.f32 %v3892_v29, %v3581_v52 }
 0xf5f   : > { %v1885_v51 = vpop.f32.mrf.mxu1 }
 0xf60   : > { %v4627_v31 = vadd.f32 %v1891_v30, %v4446_v43  ;;  %v1886_v32 = vadd.f32 %v3581_v52, %v1885_v51 }
 0xf62   : > { %v4630_v33 = vadd.f32 %v1886_v32, %v4448_v45  ;;  %v1901_v34 = vsel %vm696_vm1, %v4627_v31, 0.0 }
 0xf63   : > { %1902 = vadd.xlane.f32.xlu1 %v1901_v34 }
 0xf64   : > { %v1898_v22 = vsel %vm696_vm1, %v4630_v33, 0.0 }
 0xf65   : > { %1899 = vadd.xlane.f32.xlu0 %v1898_v22 }
 0xfec   : > { %v1903_v35 = vpop.xlane.xlu1 %1902 }
 0xfed   : > { %v1905_v36 = vmul.f32 0.03125, %v1903_v35 }
 0xfee   : > { %v1900_v37 = vpop.xlane.xlu0 %1899 }
 0xfef   : > { %v1904_v38 = vmul.f32 0.03125, %v1900_v37  ;;  %v1907_v39 = vsub.f32 %v4627_v31, %v1905_v36 }
 0xff1   : > { %v1906_v43 = vsub.f32 %v4630_v33, %v1904_v38  ;;  %v1909_v41 = vmul.f32 %v1907_v39, %v1907_v39 }
 0xff3   : > { %v1908_v40 = vmul.f32 %v1906_v43, %v1906_v43  ;;  %v1913_v42 = vsel %vm696_vm1, %v1909_v41, 0.0  ;;  %v3599_v41 = vld [vmem:[%s5000_s9 + $0x38] sm:$0xff] }
 0xff4   : > { %3923 = vmatprep.subr.mxu0 %v3599_v41 }
 0xff5   : > { %v1910_v45 = vsel %vm696_vm1, %v1908_v40, 0.0 }
 0xff6   : > { %1911 = vadd.xlane.f32.xlu0 %v1910_v45 }
 0xffa   : > { %1914 = vadd.xlane.f32.xlu0 %v1913_v42  ;;  %v3598_v42 = vld [vmem:[%s5000_s9 + $0x30] sm:$0xff] }
0x107f   : > { %v1912_v48 = vpop.xlane.xlu0 %1911 }
0x1080   : > { %v1916_v49 = vmul.f32 0.03125, %v1912_v48 }
0x1082   : > { %v1918_v50 = vadd.f32 1e-05, %v1916_v49 }
0x1083   : > { %v1915_v53 = vpop.xlane.xlu0 %1914 }
0x1084   : > { %4125 = vrsqrt.f32 %v1918_v50  ;;  %v1917_v54 = vmul.f32 0.03125, %v1915_v53 }
0x1086   : > { %v1919_v55 = vadd.f32 1e-05, %v1917_v54 }
0x1088   : > { %4127 = vrsqrt.f32 %v1919_v55  ;;  %v3594_v55 = vld [vmem:[%s4998_s7 + $0x1] ss:$0 sm:$0xff] }
0x1091   : > { %v4126_v56 = vpop.eup %4125 }
0x1092   : > { %v1922_v58 = vmul.f32 %v4126_v56, %v1906_v43 }
0x1094   : > { %v1930_v60 = vmul.f32 %v3584_v57, %v1922_v58 }
0x1095   : > { %v4128_v61 = vpop.eup %4127 }
0x1096   : > { %v1923_v18 = vmul.f32 %v4128_v61, %v1907_v39  ;;  %v1938_v62 = vadd.f32 %v3585_v59, %v1930_v60  ;;  %v3595_v60 = vld [vmem:[%s4999_s8 + $0x1] ss:$0 sm:$0xff] }
0x1098   : > { %v1931_v63 = vmul.f32 %v3584_v57, %v1923_v18  ;;  %3901 = vmatprep.mubr.msk.f32.mxu0 %vm696_vm1, %v1938_v62 }
0x109a   : > { %v1939_v0 = vadd.f32 %v3585_v59, %v1931_v63  ;;  %v3601_v63 = vld [vmem:[%s5001_s10 + $0x1] ss:$0 sm:$0xff] }
0x109c   : > { %3902 = vmatmul.mubr.msk.f32.vlgmr.msra.gmra.mxu0 %vm696_vm1, %v1939_v0 }
0x109d   : > { %3924 = vmatpush3.msra.mxu0 %v3599_v41 }
0x109e   : > { %3925 = vmatprep.subr.mxu0 %v3598_v42 }
0x109f   : > { %3926 = vmatpush3.msra.mxu0 %v3598_v42 }
0x10a0   : > { %3927 = vmatprep.subr.mxu0 %v3597_v19 }
0x10a1   : > { %3928 = vmatpush3.msra.mxu0 %v3597_v19 }
0x10a2   : > { %3929 = vmatprep.subr.mxu0 %v3596_v44 }
0x10a3   : > { %3930 = vmatpush3.msra.mxu0 %v3596_v44 }
0x115c   : > { %v3903_v9 = vpop.f32.mrf.mxu0 }
0x115d   : > { %v2029_v10 = vadd.f32 %v3903_v9, %v3586_v8 }
0x115e   : > { %v2023_v11 = vpop.f32.mrf.mxu0 }
0x115f   : > { %v2035_v12 = vmul.f32 0.70710677, %v2029_v10  ;;  %v2024_v13 = vadd.f32 %v3586_v8, %v2023_v11  ;;  %v2033_v24 = vmul.f32 0.5, %v2029_v10 }
0x1161   : > { %4129 = verf.f32 %v2035_v12  ;;  %v2034_v14 = vmul.f32 0.70710677, %v2024_v13  ;;  %v2032_v21 = vmul.f32 0.5, %v2024_v13 }
0x1163   : > { %4131 = verf.f32 %v2034_v14 }
0x116e   : > { %v4130_v15 = vpop.eup %4129 }
0x116f   : > { %v2039_v20 = vadd.f32 1.0, %v4130_v15 }
0x1170   : > { %v4132_v17 = vpop.eup %4131 }
0x1171   : > { %v2038_v23 = vadd.f32 1.0, %v4132_v17  ;;  %v2041_v26 = vmul.f32 %v2039_v20, %v2033_v24 }
0x1173   : > { %v2040_v25 = vmul.f32 %v2038_v23, %v2032_v21 }
0x1175   : > { %3920 = vmatprep.mubr.msk.f32.mxu1 %vm2057_vm4, %v2040_v25 }
0x1176   : > { %3921 = vmatmul.mubr.msk.f32.vlgmr.msra.gmra.mxu1 %vm2057_vm4, %v2041_v26 }
0x1236   : > { %v3922_v28 = vpop.f32.mrf.mxu1 }
0x1237   : > { %v2136_v52 = vadd.f32 %v3922_v28, %v3589_v27 }
0x1238   : > { %v2130_v29 = vpop.f32.mrf.mxu1 }
0x1239   : > { %v4693_v30 = vadd.f32 %v2136_v52, %v4627_v31  ;;  %v2131_v51 = vadd.f32 %v3589_v27, %v2130_v29 }
0x123b   : > { %v4696_v32 = vadd.f32 %v2131_v51, %v4630_v33  ;;  %v2148_v34 = vsel %vm696_vm1, %v4693_v30, 0.0 }
0x123c   : > { %2149 = vadd.xlane.f32.xlu1 %v2148_v34 }
0x123d   : > { %v2145_v22 = vsel %vm696_vm1, %v4696_v32, 0.0 }
0x123e   : > { %2146 = vadd.xlane.f32.xlu0 %v2145_v22 }
0x12c5   : > { %v2150_v35 = vpop.xlane.xlu1 %2149 }
0x12c6   : > { %v2152_v36 = vmul.f32 0.03125, %v2150_v35 }
0x12c7   : > { %v2147_v37 = vpop.xlane.xlu0 %2146 }
0x12c8   : > { %v2154_v38 = vsub.f32 %v4693_v30, %v2152_v36  ;;  %v2151_v39 = vmul.f32 0.03125, %v2147_v37 }
0x12ca   : > { %v2153_v31 = vsub.f32 %v4696_v32, %v2151_v39  ;;  %v2156_v43 = vmul.f32 %v2154_v38, %v2154_v38 }
0x12cc   : > { %v2160_v33 = vsel %vm696_vm1, %v2156_v43, 0.0  ;;  %v2155_v40 = vmul.f32 %v2153_v31, %v2153_v31 }
0x12cd   : > { %2161 = vadd.xlane.f32.xlu1 %v2160_v33 }
0x12ce   : > { %v2157_v45 = vsel %vm696_vm1, %v2155_v40, 0.0 }
0x12cf   : > { %2158 = vadd.xlane.f32.xlu0 %v2157_v45 }
0x1356   : > { %v2162_v46 = vpop.xlane.xlu1 %2161 }
0x1357   : > { %v2164_v47 = vmul.f32 0.03125, %v2162_v46 }
0x1358   : > { %v2159_v48 = vpop.xlane.xlu0 %2158 }
0x1359   : > { %v2166_v49 = vadd.f32 1e-05, %v2164_v47  ;;  %v2163_v50 = vmul.f32 0.03125, %v2159_v48 }
0x135b   : > { %4133 = vrsqrt.f32 %v2166_v49  ;;  %v2165_v53 = vadd.f32 1e-05, %v2163_v50 }
0x135d   : > { %4135 = vrsqrt.f32 %v2165_v53 }
0x1368   : > { %v4134_v54 = vpop.eup %4133 }
0x1369   : > { %v2170_v56 = vmul.f32 %v4134_v54, %v2154_v38 }
0x136a   : > { %v4136_v57 = vpop.eup %4135 }
0x136b   : > { %v2169_v58 = vmul.f32 %v4136_v57, %v2153_v31  ;;  %v2178_v59 = vmul.f32 %v3594_v55, %v2170_v56 }
0x136d   : > { %v2177_v61 = vmul.f32 %v3594_v55, %v2169_v58  ;;  %v2186_v62 = vadd.f32 %v3595_v60, %v2178_v59 }
0x136f   : > { %v2185_v18 = vadd.f32 %v3595_v60, %v2177_v61 }
0x1371   : > { %3931 = vmatprep.mubr.msk.f32.mxu0 %vm696_vm1, %v2185_v18 }
0x1372   : > { %3932 = vmatmul.mubr.msk.f32.vlgmr.msra.gmra.mxu0 %vm696_vm1, %v2186_v62 }
0x1432   : > { %v3933_v0 = vpop.f32.mrf.mxu0 }
0x1433   : > { %v4729_v1 = vadd.f32 %v3933_v0, %v3601_v63 }
0x1434   : > { %v2272_v2 = vpop.f32.mrf.mxu0 }
0x1435   : > { %v4731_v3 = vadd.f32 %v3601_v63, %v2272_v2  ;;  %2287 = vrot.lane.b32.xlu0 %v4729_v1, %s4239_s22  ;;  %v4749_v5 = vmul.f32 0.35355338, %v4729_v1 }
0x1437   : > { %2285 = vrot.lane.b32.xlu1 %v4731_v3, %s4239_s22  ;;  %v4738_v4 = vmul.f32 0.35355338, %v4731_v3  ;;  %s5061_s22 = smov 64  }
0x1439   : > { %2483 = vrot.lane.b32.xlu0 %v4738_v4, %s4242_s2  ;;  %3938 = vmatprep.mubr.msk.f32.mxu0 %vm976_vm2, %v4738_v4 }
0x143b   : > { %2489 = vrot.lane.b32.xlu1 %v4729_v1, %s5060_s0 }
0x143f   : > { %2487 = vrot.lane.b32.xlu1 %v4731_v3, %s5060_s0  ;;  %s5070_s0 = smov 16  }
0x1443   : > { %2485 = vrot.lane.b32.xlu1 %v4749_v5, %s4242_s2  ;;  %s5062_s2 = smov 56  }
0x14a7   : > { %v2288_v6 = vpop.permute.xlu0 %2287 }
0x14a8   : > { %3934 = vmatprep.subr.msk.mxu0 %vm976_vm2, %v2288_v6 }
0x14a9   : > { %3935 = vmatpush3.xpose.msk.msra.mxu0 %vm976_vm2, %v2288_v6  ;;  %v2286_v7 = vpop.permute.xlu1 %2285 }
0x14aa   : > { %3936 = vmatprep.subr.msk.mxu0 %vm976_vm2, %v2286_v7 }
0x14ab   : > { %v2484_v8 = vpop.permute.xlu0 %2483 }
0x14ad   : > { %3937 = vmatpush3.xpose.msk.msra.mxu0 %vm976_vm2, %v2286_v7  ;;  %v2490_v16 = vpop.permute.xlu1 %2489 }
0x14ae   : > { %3948 = vmatprep.subr.msk.mxu0 %vm976_vm2, %v2490_v16 }
0x14b0   : > { %3939 = vmatmul.mubr.msk.f32.vlgmr.msra.gmra.mxu0 %vm976_vm2, %v4749_v5 }
0x14b1   : > { %v2488_v9 = vpop.permute.xlu1 %2487  ;;  %3949 = vmatpush3.xpose.msk.msra.mxu0 %vm976_vm2, %v2490_v16  ;;  %3952 = vmatprep.mubr.msk.f32.mxu0 %vm976_vm2, %v2484_v8 }
0x14b2   : > { %3950 = vmatprep.subr.msk.mxu0 %vm976_vm2, %v2488_v9 }
0x14b5   : > { %3951 = vmatpush3.xpose.msk.msra.mxu0 %vm976_vm2, %v2488_v9  ;;  %v2486_v10 = vpop.permute.xlu1 %2485 }
0x14b8   : > { %3953 = vmatmul.mubr.msk.f32.vlgmr.msra.gmra.mxu0 %vm976_vm2, %v2486_v10 }
0x1570   : > { %v3940_v11 = vpop.f32.mrf.mxu0 }
0x1571   : > { %v2377_v12 = vsel %vm612_vm0, %v3940_v11, -inf }
0x1572   : > { %2378 = vmax.xlane.f32.xlu1 %v2377_v12  ;;  %v2365_v13 = vpop.f32.mrf.mxu0 }
0x1573   : > { %v2374_v14 = vsel %vm612_vm0, %v2365_v13, -inf }
0x1574   : > { %2375 = vmax.xlane.f32.xlu0 %v2374_v14 }
0x1578   : > { %v3954_v15 = vpop.f32.mrf.mxu0 }
0x1579   : > { %v2577_v21 = vsel %vm612_vm0, %v3954_v15, -inf }
0x157a   : > { %v2565_v17 = vpop.f32.mrf.mxu0 }
0x157b   : > { %v2574_v20 = vsel %vm612_vm0, %v2565_v17, -inf }
0x157c   : > { %2575 = vmax.xlane.f32.xlu0 %v2574_v20 }
0x1580   : > { %2578 = vmax.xlane.f32.xlu0 %v2577_v21 }
0x1583   : > { %2396 = vrot.lane.b32.xlu1 %v4731_v3, %s5061_s22 }
0x1587   : > { %2598 = vrot.lane.b32.xlu1 %v4729_v1, %s5062_s2 }
0x158b   : > { %2596 = vrot.lane.b32.xlu1 %v4731_v3, %s5062_s2 }
0x1596   : > { %2398 = vrot.lane.b32.xlu0 %v4729_v1, %s5061_s22  ;;  %s3666_s22 = sshll.u32 %s4376_s1, 8 }
0x1597   : > { %s4943_s4 = scalar_lea.hbm %s5010_s19, %s3666_s22 }
0x15fb   : > { %v2379_v23 = vpop.xlane.xlu1 %2378 }
0x15fc   : > { %v2381_v24 = vsub.f32 %v3940_v11, %v2379_v23 }
0x15fd   : > { %v2376_v25 = vpop.xlane.xlu0 %2375 }
0x15fe   : > { %v2384_v26 = vmul.f32 1.442695, %v2381_v24  ;;  %v2380_v27 = vsub.f32 %v2365_v13, %v2376_v25 }
0x15ff   : > { %v2397_v35 = vpop.permute.xlu1 %2396 }
0x1600   : > { %4137 = vpow2.f32 %v2384_v26  ;;  %v2382_v28 = vmul.f32 1.442695, %v2380_v27 }
0x1602   : > { %4139 = vpow2.f32 %v2382_v28 }
0x1603   : > { %v2599_v33 = vpop.permute.xlu1 %2598 }
0x1605   : > { %v2576_v52 = vpop.xlane.xlu0 %2575 }
0x1606   : > { %v2580_v29 = vsub.f32 %v2565_v17, %v2576_v52 }
0x1607   : > { %v2597_v19 = vpop.permute.xlu1 %2596 }
0x1608   : > { %v2582_v51 = vmul.f32 1.442695, %v2580_v29 }
0x1609   : > { %v2579_v34 = vpop.xlane.xlu0 %2578 }
0x160a   : > { %4141 = vpow2.f32 %v2582_v51  ;;  %v2581_v22 = vsub.f32 %v3954_v15, %v2579_v34 }
0x160c   : > { %v2584_v36 = vmul.f32 1.442695, %v2581_v22 }
0x160d   : > { %v4138_v37 = vpop.eup %4137  ;;  %v2399_v38 = vpop.permute.xlu0 %2398 }
0x160e   : > { %4143 = vpow2.f32 %v2584_v36  ;;  %3941 = vmatprep.subr.mxu1 %v2399_v38  ;;  %v2389_v39 = vsel %vm612_vm0, %v4138_v37, 0.0 }
0x160f   : > { %v4140_v31 = vpop.eup %4139  ;;  %2390 = vadd.xlane.f32.xlu1 %v2389_v39  ;;  %3942 = vmatpush3.msra.mxu1 %v2399_v38 }
0x1610   : > { %3943 = vmatprep.subr.mxu1 %v2397_v35  ;;  %v2386_v43 = vsel %vm612_vm0, %v4140_v31, 0.0 }
0x1611   : > { %2387 = vadd.xlane.f32.xlu0 %v2386_v43  ;;  %3944 = vmatpush3.msra.mxu1 %v2397_v35 }
0x1612   : > { %3955 = vmatprep.subr.mxu1 %v2599_v33 }
0x1617   : > { %v4142_v40 = vpop.eup %4141 }
0x1618   : > { %v2586_v45 = vsel %vm612_vm0, %v4142_v40, 0.0 }
0x1619   : > { %2587 = vadd.xlane.f32.xlu0 %v2586_v45 }
0x161b   : > { %v4144_v41 = vpop.eup %4143 }
0x161c   : > { %v2589_v42 = vsel %vm612_vm0, %v4144_v41, 0.0 }
0x161d   : > { %2590 = vadd.xlane.f32.xlu1 %v2589_v42 }
0x162e   : > { %2687 = vrot.lane.b32.xlu1 %v4731_v3, %s5063_s20 }
0x162f   : > { %2689 = vrot.lane.b32.xlu0 %v4729_v1, %s5063_s20 }
0x1632   : > { %2685 = vrot.lane.b32.xlu1 %v4749_v5, %s5064_s25 }
0x1633   : > { %2683 = vrot.lane.b32.xlu0 %v4738_v4, %s5064_s25 }
0x1698   : > { %v2391_v44 = vpop.xlane.xlu1 %2390 }
0x1699   : > { %4145 = vrcp.f32 %v2391_v44 }
0x169a   : > { %v2388_v46 = vpop.xlane.xlu0 %2387 }
0x169b   : > { %4147 = vrcp.f32 %v2388_v46 }
0x16a2   : > { %v2588_v47 = vpop.xlane.xlu0 %2587 }
0x16a3   : > { %4149 = vrcp.f32 %v2588_v47 }
0x16a6   : > { %v2591_v48 = vpop.xlane.xlu1 %2590  ;;  %v4146_v49 = vpop.eup %4145 }
0x16a7   : > { %4151 = vrcp.f32 %v2591_v48  ;;  %v2395_v54 = vmul.f32 %v4146_v49, %v4138_v37  ;;  %v2690_v55 = vpop.permute.xlu0 %2689 }
0x16a8   : > { %v4148_v50 = vpop.eup %4147 }
0x16a9   : > { %v2394_v53 = vmul.f32 %v4148_v50, %v4140_v31 }
0x16aa   : > { %v2688_v61 = vpop.permute.xlu1 %2687 }
0x16ab   : > { %3945 = vmatprep.mubr.msk.f32.mxu1 %vm612_vm0, %v2394_v53  ;;  %v2684_v60 = vpop.permute.xlu0 %2683 }
0x16ac   : > { %3946 = vmatmul.mubr.msk.f32.vlgmr.msra.gmra.mxu1 %vm612_vm0, %v2395_v54 }
0x16ad   : > { %3956 = vmatpush3.msra.mxu1 %v2599_v33 }
0x16ae   : > { %3957 = vmatprep.subr.mxu1 %v2597_v19  ;;  %v2686_v18 = vpop.permute.xlu1 %2685 }
0x16af   : > { %3958 = vmatpush3.msra.mxu1 %v2597_v19 }
0x16b0   : > { %v4150_v56 = vpop.eup %4149  ;;  %3962 = vmatprep.subr.msk.mxu1 %vm976_vm2, %v2690_v55 }
0x16b1   : > { %v2594_v57 = vmul.f32 %v4150_v56, %v4142_v40  ;;  %v3630_v56 = vld [vmem:[%s5002_s11 + $0x30] sm:$0xff] }
0x16b3   : > { %3959 = vmatprep.mubr.msk.f32.mxu1 %vm612_vm0, %v2594_v57  ;;  %v3629_v57 = vld [vmem:[%s5002_s11 + $0x28] sm:$0xff] }
0x16b4   : > { %v4152_v58 = vpop.eup %4151 }
0x16b5   : > { %v2595_v59 = vmul.f32 %v4152_v58, %v4144_v41  ;;  %v3628_v58 = vld [vmem:[%s5002_s11 + $0x20] sm:$0xff] }
0x16b7   : > { %3960 = vmatmul.mubr.msk.f32.vlgmr.msra.gmra.mxu1 %vm612_vm0, %v2595_v59 }
0x16b8   : > { %3963 = vmatpush3.xpose.msk.msra.mxu1 %vm976_vm2, %v2690_v55  ;;  %3966 = vmatprep.mubr.msk.f32.mxu1 %vm976_vm2, %v2684_v60 }
0x16b9   : > { %3964 = vmatprep.subr.msk.mxu1 %vm976_vm2, %v2688_v61 }
0x16bc   : > { %3965 = vmatpush3.xpose.msk.msra.mxu1 %vm976_vm2, %v2688_v61 }
0x16bf   : > { %3967 = vmatmul.mubr.msk.f32.vlgmr.msra.gmra.mxu1 %vm976_vm2, %v2686_v18 }
0x176c   : > { %v4799_v62 = vpop.f32.mrf.mxu1 }
0x176e   : > { %v4801_v63 = vpop.f32.mrf.mxu1 }
0x1777   : > { %v4803_v0 = vpop.f32.mrf.mxu1 }
0x1779   : > { %v2674_v2 = vpop.f32.mrf.mxu1 }
0x177f   : > { %v3968_v6 = vpop.f32.mrf.mxu1 }
0x1780   : > { %v2777_v7 = vsel %vm612_vm0, %v3968_v6, -inf }
0x1781   : > { %2778 = vmax.xlane.f32.xlu1 %v2777_v7  ;;  %v2765_v16 = vpop.f32.mrf.mxu1 }
0x1782   : > { %v2774_v8 = vsel %vm612_vm0, %v2765_v16, -inf }
0x1783   : > { %2775 = vmax.xlane.f32.xlu0 %v2774_v8 }
0x1792   : > { %2796 = vrot.lane.b32.xlu1 %v4731_v3, %s5065_s26 }
0x1796   : > { %2889 = vrot.lane.b32.xlu1 %v4729_v1, %s5066_s23 }
0x179a   : > { %2887 = vrot.lane.b32.xlu1 %v4731_v3, %s5066_s23  ;;  %s593_s23 = sand.u32 1, %s4229_s30  }
0x179b   : > { %s4950_s1 = scalar_lea.sflag [#allocation3], %s593_s23 }
0x179e   : > { %2885 = vrot.lane.b32.xlu1 %v4749_v5, %s5067_s27 }
0x180a   : > { %v2779_v9 = vpop.xlane.xlu1 %2778 }
0x180b   : > { %v2781_v10 = vsub.f32 %v3968_v6, %v2779_v9 }
0x180c   : > { %v2776_v11 = vpop.xlane.xlu0 %2775 }
0x180d   : > { %v2784_v12 = vmul.f32 1.442695, %v2781_v10  ;;  %v2780_v13 = vsub.f32 %v2765_v16, %v2776_v11 }
0x180e   : > { %v2797_v24 = vpop.permute.xlu1 %2796 }
0x180f   : > { %4153 = vpow2.f32 %v2784_v12  ;;  %v2782_v14 = vmul.f32 1.442695, %v2780_v13 }
0x1811   : > { %4155 = vpow2.f32 %v2782_v14 }
0x1812   : > { %v2890_v26 = vpop.permute.xlu1 %2889 }
0x1816   : > { %v2888_v51 = vpop.permute.xlu1 %2887 }
0x181a   : > { %v2886_v34 = vpop.permute.xlu1 %2885 }
0x181c   : > { %v4154_v15 = vpop.eup %4153 }
0x181d   : > { %v2789_v17 = vsel %vm612_vm0, %v4154_v15, 0.0 }
0x181e   : > { %v4156_v20 = vpop.eup %4155  ;;  %2790 = vadd.xlane.f32.xlu0 %v2789_v17 }
0x181f   : > { %v2786_v21 = vsel %vm612_vm0, %v4156_v20, 0.0 }
0x1822   : > { %2787 = vadd.xlane.f32.xlu0 %v2786_v21 }
0x1838   : > { %2798 = vrot.lane.b32.xlu0 %v4729_v1, %s5065_s26 }
0x183c   : > { %2883 = vrot.lane.b32.xlu0 %v4738_v4, %s5067_s27  ;;  %s3541_s27 = sshll.u32 %s593_s23, 4 }
0x183d   : > { %s595_s2 = scalar_lea.vmem [#allocation2], %s3541_s27 }
0x183e   : > { %s3475_s20 = sshll.u32 %s595_s2, 4  ;;  %s4947_s20 = int_to_ptr.vmem [resolvable:$true] %s3475_s20 }
0x183f   : > { %s4177_s27 = scalar_lea.vmem %s4947_s20, 256 }
0x1840   : > { %p4178_p11 = scmp.ne.s32.totalorder %s4947_s20, %s4177_s27 }
0x1842   : > { %p4179_p12 = pnand %p4178_p11, %p4393_p5 }
0x1844   : > { %p4180_p13 = pneg %p4179_p12 }
0x18a7   : > { %v2791_v5 = vpop.xlane.xlu0 %2790 }
0x18a8   : > { %4157 = vrcp.f32 %v2791_v5 }
0x18ab   : > { %v2788_v23 = vpop.xlane.xlu0 %2787 }
0x18ac   : > { %4159 = vrcp.f32 %v2788_v23 }
0x18af   : > { %v2799_v25 = vpop.permute.xlu0 %2798 }
0x18b0   : > { %3969 = vmatprep.subr.mxu0 %v2799_v25 }
0x18b1   : > { %3970 = vmatpush3.msra.mxu0 %v2799_v25 }
0x18b2   : > { %3971 = vmatprep.subr.mxu0 %v2797_v24 }
0x18b3   : > { %3972 = vmatpush3.msra.mxu0 %v2797_v24  ;;  %v2884_v4 = vpop.permute.xlu0 %2883 }
0x18b4   : > { %3976 = vmatprep.subr.msk.mxu0 %vm976_vm2, %v2890_v26 }
0x18b5   : > { %v4158_v27 = vpop.eup %4157 }
0x18b6   : > { %v2795_v29 = vmul.f32 %v4158_v27, %v4154_v15 }
0x18b9   : > { %v4160_v28 = vpop.eup %4159 }
0x18ba   : > { %v2794_v52 = vmul.f32 %v4160_v28, %v4156_v20 }
0x18bc   : > { %3973 = vmatprep.mubr.msk.f32.mxu0 %vm612_vm0, %v2794_v52 }
0x18bd   : > { %3974 = vmatmul.mubr.msk.f32.vlgmr.msra.gmra.mxu0 %vm612_vm0, %v2795_v29 }
0x18be   : > { %3977 = vmatpush3.xpose.msk.msra.mxu0 %vm976_vm2, %v2890_v26  ;;  %3980 = vmatprep.mubr.msk.f32.mxu0 %vm976_vm2, %v2884_v4  ;;  %v3643_v4 = vld [vmem:[%s5006_s15 + $0x38] sm:$0xff] }
0x18bf   : > { %3978 = vmatprep.subr.msk.mxu0 %vm976_vm2, %v2888_v51 }
0x18c2   : > { %3979 = vmatpush3.xpose.msk.msra.mxu0 %vm976_vm2, %v2888_v51  ;;  %v3642_v51 = vld [vmem:[%s5006_s15 + $0x30] sm:$0xff] }
0x18c3   : > { %4001 = vmatprep.subr.mxu0 %v3643_v4 }
0x18c5   : > { %3981 = vmatmul.mubr.msk.f32.vlgmr.msra.gmra.mxu0 %vm976_vm2, %v2886_v34  ;;  %v3641_v34 = vld [vmem:[%s5006_s15 + $0x28] sm:$0xff] }
0x18c6   : > { %4002 = vmatpush3.msra.mxu0 %v3643_v4 }
0x18c7   : > { %4003 = vmatprep.subr.mxu0 %v3642_v51 }
0x18c8   : > { %4004 = vmatpush3.msra.mxu0 %v3642_v51 }
0x18c9   : > { %4005 = vmatprep.subr.mxu0 %v3641_v34 }
0x18ca   : > { %4006 = vmatpush3.msra.mxu0 %v3641_v34 }
0x197d   : > { %v3975_v22 = vpop.f32.mrf.mxu0 }
0x197f   : > { %v2874_v35 = vpop.f32.mrf.mxu0 }
0x1985   : > { %v3982_v36 = vpop.f32.mrf.mxu0 }
0x1986   : > { %v2977_v37 = vsel %vm612_vm0, %v3982_v36, -inf }
0x1987   : > { %2978 = vmax.xlane.f32.xlu1 %v2977_v37  ;;  %v2965_v38 = vpop.f32.mrf.mxu0 }
0x1988   : > { %v2974_v39 = vsel %vm612_vm0, %v2965_v38, -inf }
0x1989   : > { %2975 = vmax.xlane.f32.xlu0 %v2974_v39 }
0x1998   : > { %2996 = vrot.lane.b32.xlu1 %v4731_v3, %s5068_s24 }
0x199c   : > { %3085 = vrot.lane.b32.xlu1 %v2674_v2, %s5069_s28 }
0x19a0   : > { %3087 = vrot.lane.b32.xlu1 %v4803_v0, %s5069_s28 }
0x19a4   : > { %3095 = vrot.lane.b32.xlu1 %v3975_v22, %s5070_s0  ;;  %v3640_v22 = vld [vmem:[%s5006_s15 + $0x20] sm:$0xff] }
0x19a5   : > { %4007 = vmatprep.subr.mxu0 %v3640_v22 }
0x19a6   : > { %4008 = vmatpush3.msra.mxu0 %v3640_v22 }
0x1a10   : > { %v2979_v31 = vpop.xlane.xlu1 %2978 }
0x1a11   : > { %v2981_v43 = vsub.f32 %v3982_v36, %v2979_v31 }
0x1a12   : > { %v2976_v33 = vpop.xlane.xlu0 %2975 }
0x1a13   : > { %v2984_v40 = vmul.f32 1.442695, %v2981_v43  ;;  %v2980_v45 = vsub.f32 %v2965_v38, %v2976_v33  ;;  %v3638_v33 = vld [vmem:[%s5004_s13 + $0x1] ss:$0 sm:$0xff] }
0x1a14   : > { %v2997_v49 = vpop.permute.xlu1 %2996 }
0x1a15   : > { %4161 = vpow2.f32 %v2984_v40  ;;  %v2982_v41 = vmul.f32 1.442695, %v2980_v45  ;;  %v3639_v45 = vld [vmem:[%s5005_s14 + $0x1] ss:$0 sm:$0xff] }
0x1a17   : > { %4163 = vpow2.f32 %v2982_v41 }
0x1a18   : > { %v3086_v61 = vpop.permute.xlu1 %3085 }
0x1a19   : > { %v3107_v6 = vsel %vm976_vm2, %v4801_v63, %v3086_v61  ;;  %v3633_v63 = vld [vmem:[%s5003_s12 + $0x1] ss:$0 sm:$0xff] }
0x1a1c   : > { %v3088_v18 = vpop.permute.xlu1 %3087 }
0x1a1d   : > { %v3108_v16 = vsel %vm976_vm2, %v4799_v62, %v3088_v18 }
0x1a20   : > { %v3096_v0 = vpop.permute.xlu1 %3095 }
0x1a21   : > { %v3110_v10 = vsel %vm612_vm0, %v3108_v16, %v3096_v0 }
0x1a22   : > { %v4162_v42 = vpop.eup %4161 }
0x1a23   : > { %v2989_v19 = vsel %vm612_vm0, %v4162_v42, 0.0 }
0x1a24   : > { %v4164_v44 = vpop.eup %4163  ;;  %2990 = vadd.xlane.f32.xlu0 %v2989_v19 }
0x1a25   : > { %v2986_v3 = vsel %vm612_vm0, %v4164_v44, 0.0 }
0x1a28   : > { %2987 = vadd.xlane.f32.xlu0 %v2986_v3 }
0x1a3e   : > { %2998 = vrot.lane.b32.xlu0 %v4729_v1, %s5068_s24  ;;  %v3631_v1 = vld [vmem:[%s5002_s11 + $0x38] sm:$0xff]  ;;  %s4253_s24 = smov [#allocation2]  }
0x1a42   : > { %3093 = vrot.lane.b32.xlu0 %v2874_v35, %s5070_s0  ;;  %s5071_s0 = smov 24  }
0x1aad   : > { %v2991_v46 = vpop.xlane.xlu0 %2990 }
0x1aae   : > { %4165 = vrcp.f32 %v2991_v46 }
0x1ab1   : > { %v2988_v47 = vpop.xlane.xlu0 %2987 }
0x1ab2   : > { %4167 = vrcp.f32 %v2988_v47  ;;  %v3655_v47 = vld [vmem:[%s5008_s17 + $0x78] sm:$0xff] }
0x1ab5   : > { %v2999_v48 = vpop.permute.xlu0 %2998 }
0x1ab6   : > { %3983 = vmatprep.subr.mxu1 %v2999_v48 }
0x1ab7   : > { %3984 = vmatpush3.msra.mxu1 %v2999_v48  ;;  %v3654_v48 = vld [vmem:[%s5008_s17 + $0x70] sm:$0xff] }
0x1ab8   : > { %3985 = vmatprep.subr.mxu1 %v2997_v49 }
0x1ab9   : > { %3986 = vmatpush3.msra.mxu1 %v2997_v49  ;;  %v3094_v2 = vpop.permute.xlu0 %3093  ;;  %v3653_v49 = vld [vmem:[%s5008_s17 + $0x68] sm:$0xff] }
0x1aba   : > { %3990 = vmatprep.subr.mxu1 %v3631_v1  ;;  %v3109_v8 = vsel %vm612_vm0, %v3107_v6, %v3094_v2 }
0x1abb   : > { %v4166_v50 = vpop.eup %4165 }
0x1abc   : > { %v2995_v55 = vmul.f32 %v4166_v50, %v4162_v42  ;;  %v3652_v50 = vld [vmem:[%s5008_s17 + $0x60] sm:$0xff] }
0x1abf   : > { %v4168_v53 = vpop.eup %4167 }
0x1ac0   : > { %v2994_v54 = vmul.f32 %v4168_v53, %v4164_v44  ;;  %v3651_v53 = vld [vmem:[%s5008_s17 + $0x58] sm:$0xff] }
0x1ac2   : > { %3987 = vmatprep.mubr.msk.f32.mxu1 %vm612_vm0, %v2994_v54  ;;  %v3650_v54 = vld [vmem:[%s5008_s17 + $0x50] sm:$0xff] }
0x1ac3   : > { %3988 = vmatmul.mubr.msk.f32.vlgmr.msra.gmra.mxu1 %vm612_vm0, %v2995_v55  ;;  %v3649_v55 = vld [vmem:[%s5008_s17 + $0x48] sm:$0xff] }
0x1ac4   : > { %3991 = vmatpush3.msra.mxu1 %v3631_v1  ;;  %v3648_v1 = vld [vmem:[%s5008_s17 + $0x40] sm:$0xff] }
0x1ac5   : > { %3992 = vmatprep.subr.mxu1 %v3630_v56 }
0x1ac6   : > { %3993 = vmatpush3.msra.mxu1 %v3630_v56  ;;  %v3645_v56 = vld [vmem:[%s5007_s16 + $0x1] ss:$0 sm:$0xff] }
0x1ac7   : > { %3994 = vmatprep.subr.mxu1 %v3629_v57 }
0x1ac8   : > { %3995 = vmatpush3.msra.mxu1 %v3629_v57 }
0x1ac9   : > { %3996 = vmatprep.subr.mxu1 %v3628_v58 }
0x1aca   : > { %3997 = vmatpush3.msra.mxu1 %v3628_v58 }
0x1acb   : > { %4012 = vmatprep.subr.mxu1 %v3655_v47 }
0x1b83   : > { %v3989_v59 = vpop.f32.mrf.mxu1 }
0x1b84   : > { %3103 = vrot.lane.b32.xlu1 %v3989_v59, %s5071_s0 }
0x1b85   : > { %v3074_v60 = vpop.f32.mrf.mxu1 }
0x1b86   : > { %3101 = vrot.lane.b32.xlu0 %v3074_v60, %s5071_s0  ;;  %s4181_s0 = sshll.u32 %s4253_s24, 4  ;;  %s4182_s0 = int_to_ptr.vmem [resolvable:$false] %s4181_s0 }
0x1b87   : > { %s4183_s22 = scalar_lea.vmem %s4182_s0, 512  ;;  %p4184_p0 = scmp.lt.s32.totalorder %s4947_s20, %s4182_s0 }
0x1b88   : > { %p4185_p1 = scmp.lt.s32.totalorder %s4183_s22, %s4177_s27 }
0x1b8a   : > { %p4186_p2 = por %p4185_p1, %p4184_p0 }
0x1b8c   : > { %p4187_p3 = pnand %p4186_p2, %p4180_p13 }
0x1bf6   : > { %v3104_v7 = vpop.permute.xlu1 %3103 }
0x1bf7   : > { %v3112_v12 = vsel %vm1799_vm3, %v3110_v10, %v3104_v7 }
0x1bf8   : > { %v3102_v9 = vpop.permute.xlu0 %3101 }
0x1bf9   : > { %v3111_v11 = vsel %vm1799_vm3, %v3109_v8, %v3102_v9 }
0x1bfa   : > { %3998 = vmatprep.mubr.msk.f32.mxu1 %vm696_vm1, %v3111_v11  ;;  %v3657_v11 = vld [vmem:[%s5009_s18 + $0x1] ss:$0 sm:$0xff] }
0x1bfb   : > { %3999 = vmatmul.mubr.msk.f32.vlgmr.msra.gmra.mxu1 %vm696_vm1, %v3112_v12 }
0x1bfc   : > { %4013 = vmatpush3.msra.mxu1 %v3655_v47 }
0x1bfd   : > { %4014 = vmatprep.subr.mxu1 %v3654_v48 }
0x1bfe   : > { %4015 = vmatpush3.msra.mxu1 %v3654_v48 }
0x1bff   : > { %4016 = vmatprep.subr.mxu1 %v3653_v49 }
0x1c00   : > { %4017 = vmatpush3.msra.mxu1 %v3653_v49 }
0x1c01   : > { %4018 = vmatprep.subr.mxu1 %v3652_v50 }
0x1c02   : > { %4019 = vmatpush3.msra.mxu1 %v3652_v50 }
0x1c03   : > { %4020 = vmatprep.subr.mxu1 %v3651_v53 }
0x1c04   : > { %4021 = vmatpush3.msra.mxu1 %v3651_v53 }
0x1c05   : > { %4022 = vmatprep.subr.mxu1 %v3650_v54 }
0x1c06   : > { %4023 = vmatpush3.msra.mxu1 %v3650_v54 }
0x1c07   : > { %4024 = vmatprep.subr.mxu1 %v3649_v55 }
0x1c08   : > { %4025 = vmatpush3.msra.mxu1 %v3649_v55 }
0x1c09   : > { %4026 = vmatprep.subr.mxu1 %v3648_v1 }
0x1c0a   : > { %4027 = vmatpush3.msra.mxu1 %v3648_v1 }
0x1cbb   : > { %v4000_v13 = vpop.f32.mrf.mxu1 }
0x1cbc   : > { %v3204_v14 = vadd.f32 %v4000_v13, %v3633_v63 }
0x1cbd   : > { %v3198_v62 = vpop.f32.mrf.mxu1 }
0x1cbe   : > { %v4872_v15 = vadd.f32 %v3204_v14, %v4693_v30  ;;  %v3199_v17 = vadd.f32 %v3633_v63, %v3198_v62 }
0x1cc0   : > { %v4875_v20 = vadd.f32 %v3199_v17, %v4696_v32  ;;  %v3216_v21 = vsel %vm696_vm1, %v4872_v15, 0.0 }
0x1cc1   : > { %3217 = vadd.xlane.f32.xlu1 %v3216_v21 }
0x1cc2   : > { %v3213_v5 = vsel %vm696_vm1, %v4875_v20, 0.0 }
0x1cc3   : > { %3214 = vadd.xlane.f32.xlu0 %v3213_v5 }
0x1d4a   : > { %v3218_v23 = vpop.xlane.xlu1 %3217 }
0x1d4b   : > { %v3220_v24 = vmul.f32 0.03125, %v3218_v23 }
0x1d4c   : > { %v3215_v25 = vpop.xlane.xlu0 %3214 }
0x1d4d   : > { %v3219_v26 = vmul.f32 0.03125, %v3215_v25  ;;  %v3222_v27 = vsub.f32 %v4872_v15, %v3220_v24 }
0x1d4f   : > { %v3221_v30 = vsub.f32 %v4875_v20, %v3219_v26  ;;  %v3224_v52 = vmul.f32 %v3222_v27, %v3222_v27 }
0x1d51   : > { %v3223_v28 = vmul.f32 %v3221_v30, %v3221_v30  ;;  %v3228_v29 = vsel %vm696_vm1, %v3224_v52, 0.0 }
0x1d53   : > { %v3225_v32 = vsel %vm696_vm1, %v3223_v28, 0.0 }
0x1d54   : > { %3226 = vadd.xlane.f32.xlu0 %v3225_v32 }
0x1d58   : > { %3229 = vadd.xlane.f32.xlu0 %v3228_v29 }
0x1ddd   : > { %v3227_v35 = vpop.xlane.xlu0 %3226 }
0x1dde   : > { %v3231_v36 = vmul.f32 0.03125, %v3227_v35 }
0x1de0   : > { %v3233_v37 = vadd.f32 1e-05, %v3231_v36 }
0x1de1   : > { %v3230_v38 = vpop.xlane.xlu0 %3229 }
0x1de2   : > { %4169 = vrsqrt.f32 %v3233_v37  ;;  %v3232_v39 = vmul.f32 0.03125, %v3230_v38 }
0x1de4   : > { %v3234_v31 = vadd.f32 1e-05, %v3232_v39 }
0x1de6   : > { %4171 = vrsqrt.f32 %v3234_v31 }
0x1def   : > { %v4170_v43 = vpop.eup %4169 }
0x1df0   : > { %v3237_v40 = vmul.f32 %v4170_v43, %v3221_v30 }
0x1df2   : > { %v3245_v41 = vmul.f32 %v3638_v33, %v3237_v40 }
0x1df3   : > { %v4172_v42 = vpop.eup %4171 }
0x1df4   : > { %v3238_v19 = vmul.f32 %v4172_v42, %v3222_v27  ;;  %v3253_v44 = vadd.f32 %v3639_v45, %v3245_v41 }
0x1df6   : > { %v3246_v3 = vmul.f32 %v3638_v33, %v3238_v19  ;;  %4009 = vmatprep.mubr.msk.f32.mxu0 %vm696_vm1, %v3253_v44 }
0x1df8   : > { %v3254_v46 = vadd.f32 %v3639_v45, %v3246_v3 }
0x1dfa   : > { %4010 = vmatmul.mubr.msk.f32.vlgmr.msra.gmra.mxu0 %vm696_vm1, %v3254_v46 }
0x1eba   : > { %v4011_v57 = vpop.f32.mrf.mxu0 }
0x1ebb   : > { %v3346_v58 = vadd.f32 %v4011_v57, %v3645_v56 }
0x1ebc   : > { %v3340_v59 = vpop.f32.mrf.mxu0 }
0x1ebd   : > { %v3352_v60 = vmul.f32 0.70710677, %v3346_v58  ;;  %v3341_v61 = vadd.f32 %v3645_v56, %v3340_v59  ;;  %v3350_v8 = vmul.f32 0.5, %v3346_v58 }
0x1ebf   : > { %4173 = verf.f32 %v3352_v60  ;;  %v3351_v18 = vmul.f32 0.70710677, %v3341_v61  ;;  %v3349_v7 = vmul.f32 0.5, %v3341_v61 }
0x1ec1   : > { %4175 = verf.f32 %v3351_v18 }
0x1ecc   : > { %v4174_v0 = vpop.eup %4173 }
0x1ecd   : > { %v3356_v6 = vadd.f32 1.0, %v4174_v0 }
0x1ece   : > { %v4176_v2 = vpop.eup %4175 }
0x1ecf   : > { %v3355_v16 = vadd.f32 1.0, %v4176_v2  ;;  %v3358_v10 = vmul.f32 %v3356_v6, %v3350_v8 }
0x1ed1   : > { %v3357_v9 = vmul.f32 %v3355_v16, %v3349_v7 }
0x1ed3   : > { %4028 = vmatprep.mubr.msk.f32.mxu1 %vm2057_vm4, %v3357_v9 }
0x1ed4   : > { %4029 = vmatmul.mubr.msk.f32.vlgmr.msra.gmra.mxu1 %vm2057_vm4, %v3358_v10 }
0x1f94   : > { %v4030_v12 = vpop.f32.mrf.mxu1 }
0x1f95   : > { %v3454_v63 = vadd.f32 %v4030_v12, %v3657_v11 }
0x1f96   : > { %v3448_v13 = vpop.f32.mrf.mxu1 }
0x1f97   : > { %v3458_v14 = vadd.f32 %v3454_v63, %v4872_v15  ;;  %v3449_v62 = vadd.f32 %v3657_v11, %v3448_v13 }
0x1f99   : > { %3460 = vst.msk [vmem:[%s595_s2 + $0x8] sm:$0xff] %vm696_vm1, %v3458_v14  ;;  %v3457_v17 = vadd.f32 %v3449_v62, %v4875_v20 }
0x1f9b   : > { %3459 = vst.msk [vmem:[%s595_s2] sm:$0xff] %vm696_vm1, %v3457_v17 }
0x1f9c   : > { %4190 = shalt.err (!%p4187_p3)
}
0x1f9d   : > { %s4191_s23 = scalar_lea.hbm %s4943_s4, 256  ;;  %s4195_s26 = scalar_lea.hbm %s5010_s19, 512 }
0x1f9e   : > { %p4192_p4 = scmp.ne.s32.totalorder %s4943_s4, %s4191_s23  ;;  %p4196_p9 = scmp.lt.s32.totalorder %s4943_s4, %s5010_s19 }
0x1f9f   : > { %p4197_p10 = scmp.lt.s32.totalorder %s4195_s26, %s4191_s23 }
0x1fa0   : > { %p4193_p7 = pnand %p4192_p4, %p4393_p5 }
0x1fa1   : > { %p4198_p11 = por %p4197_p10, %p4196_p9 }
0x1fa2   : > { %p4194_p8 = pneg %p4193_p7 }
0x1fa4   : > { %p4199_p12 = pnand %p4198_p11, %p4194_p8 }
0x1fa6   : > { %4202 = shalt.err (!%p4199_p12)
}
0x1fa7   : > { %s4254_s27 = smov 128  }
0x1fa8   : > { %4031 = dma.vmem_to_hbm [thread:$0]  (%p4393_p5), %s4947_s20, 256, %s4943_s4, %s4950_s1, %s4254_s27, %s4254_s27, %s5069_s28  }
0x1fa9 PF: > { %s5072_s0 = sld [smem:[#allocation5_spill]]  ;;  %p4037_p13 = scmp.ge.s32.totalorder %s4237_s21, 2 }
0x1fab   : > { %p4034_p0 = pnand %p4037_p13, %p4397_p6 }
0x1fad   : > { %p4035_p1 = pneg %p4034_p0 }
0x1faf   : > { %s3490_s2 = sand.u32 1, %s5072_s0  }
0x1fb0   : > { %s3491_s5 = scalar_lea.sflag [#allocation3], %s3490_s2 }
0x1fb1   : > { %4220 = dma.done.wait (%p4035_p1), %s3491_s5, 256  }
0x1fb2   : > { %4222 = vsyncadd (%p4035_p1), %s3491_s5, 4294967040  ;;  %s5074_s21 = sld [smem:[#allocation7_spill]]  ;;  %s5077_s0 = smov %s4229_s30 }
0x1fb3   : > { %s5075_s3 = sld [smem:[#allocation6_spill]] }
0x1fb4   : > { %s5076_s20 = sld [smem:[#allocation8_spill]] }
0x1fb8   : > { %p29_p2 = scmp.ge.s32.totalorder %s5074_s21, 4  }
0x1fb9   : > { %s5078_s30 = smov %s5075_s3 }
0x1fba   :  { %31 = sbr.rel (!%p29_p2) target bundleno = 10 (0xa), region = 143 }
0x1fbf   :  { %3496 = vsyncpa [#allocation3], 1 }
0x1fc0   :  { %3498 = vsyncpa [#allocation3 + $0x1], 1 }

</bundles_post_ra>
